<compile_context>
chip_gen: v6e
topology: v6e:2x2x1
jax: 0.10.0
libtpu: 0.0.40
codegen_flags: <defaults>
</compile_context>

<pallas_src>
import jax
import jax.numpy as jnp
from jax.experimental import pallas as pl
from jax.experimental.pallas import tpu as pltpu


def _se_kernel(s_ref, w1t_ref, b1_ref, x_ref, w2_ref, o_ref):
    # ---- squeeze path: gate[1, Cin] = sigmoid(w1 @ s + b1) ----------------
    # VPU lane-broadcast multiply + XLU sublane reduce (no M=1 MXU matmul).
    #   s_ref   : [Csq, 1]    f32
    #   w1t_ref : [Csq, Cin]  f32
    prod = w1t_ref[...] * s_ref[...]                           # [Csq, Cin]
    z = jnp.sum(prod, axis=0, keepdims=True) + b1_ref[...]     # [1, Cin] f32
    gate = jax.nn.sigmoid(z)                                   # [1, Cin] f32 (EUP)

    # ---- fold gate into the small weight (exact reassociation) ------------
    #   (w2 * gate) @ x  ==  w2 @ (gate * x)
    w2s = (w2_ref[...] * gate).astype(jnp.bfloat16)            # [Cout, Cin] bf16

    # ---- projection: out[Cout, HW] = w2s @ x  (single MXU matmul) ----------
    xb = x_ref[...].astype(jnp.bfloat16)                       # [Cin, HW] bf16
    o_ref[...] = jnp.dot(w2s, xb, preferred_element_type=jnp.float32)


def prepare_params(w1_oihw, b1, w2_oihw):
    """One-time weight layout/dtype prep (done once, outside the jitted step).

    conv2d61.weight [Cin, Csq, 1, 1] -> w1t [Csq, Cin]  f32   (transposed once)
    conv2d61.bias   [Cin]            -> b1r [1,   Cin]  f32
    conv2d62.weight [Cout, Cin, 1, 1]-> w2  [Cout, Cin] bf16  (cast once)
    """
    Cin, Csq = w1_oihw.shape[0], w1_oihw.shape[1]
    Cout = w2_oihw.shape[0]
    w1t = jnp.transpose(w1_oihw.reshape(Cin, Csq), (1, 0)).astype(jnp.float32)
    b1r = b1.reshape(1, Cin).astype(jnp.float32)
    w2m = w2_oihw.reshape(Cout, Cin).astype(jnp.bfloat16)
    return w1t, b1r, w2m


def se_block(x204, x201, w1t, b1r, w2m):
    """Forward of M: conv2d61(1x1) -> sigmoid -> * x201 -> conv2d62(1x1).

    Channel-major throughout: only pure reshapes of NCHW buffers on either
    side of the pallas_call (no transposes of activations or the output).
    """
    N, Cin, H, W = x201.shape
    assert N == 1, "kernel written for batch 1 (matches the reference module)"
    Csq = x204.shape[1]
    Cout = w2m.shape[0]
    HW = H * W

    x = x201.reshape(Cin, HW)      # [768, 196]  pure reshape (N == 1)
    s = x204.reshape(Csq, 1)       # [48, 1]     pure reshape

    flops = 2 * Cout * Cin * HW + 2 * Csq * Cin + 2 * Cout * Cin
    bytes_accessed = (x.size * 4 + s.size * 4 + w1t.size * 4 + b1r.size * 4
                      + w2m.size * 2 + Cout * HW * 4)

    out = pl.pallas_call(
        _se_kernel,
        out_shape=jax.ShapeDtypeStruct((Cout, HW), jnp.float32),
        in_specs=[
            pl.BlockSpec(memory_space=pltpu.VMEM),  # s    [Csq, 1]
            pl.BlockSpec(memory_space=pltpu.VMEM),  # w1t  [Csq, Cin]
            pl.BlockSpec(memory_space=pltpu.VMEM),  # b1   [1, Cin]
            pl.BlockSpec(memory_space=pltpu.VMEM),  # x    [Cin, HW]
            pl.BlockSpec(memory_space=pltpu.VMEM),  # w2   [Cout, Cin]
        ],
        out_specs=pl.BlockSpec(memory_space=pltpu.VMEM),
        cost_estimate=pl.CostEstimate(
            flops=flops, transcendentals=Cin, bytes_accessed=bytes_accessed),
    )(s, w1t, b1r, x, w2m)

    # [Cout, HW] -> [1, Cout, H, W] : pure reshape, no transpose.
    return out.reshape(1, Cout, H, W)


def reference(x204, x201, w1_oihw, b1, w2_oihw):
    """Pure-JAX f32 reference of the module's math (1x1 convs as einsums)."""
    z = jnp.einsum("oc,nchw->nohw", w1_oihw[:, :, 0, 0], x204,
                   precision=jax.lax.Precision.HIGHEST)
    z = z + b1[None, :, None, None]
    g = jax.nn.sigmoid(z)
    xg = g * x201
    return jnp.einsum("oc,nchw->nohw", w2_oihw[:, :, 0, 0], xg,
                      precision=jax.lax.Precision.HIGHEST)


if __name__ == "__main__":
    key = jax.random.PRNGKey(0)
    k1, k2, k3, k4, k5 = jax.random.split(key, 5)

    N, Cin, H, W = 1, 768, 14, 14
    Csq, Cout = 48, 192

    x201 = jax.random.normal(k1, (N, Cin, H, W), dtype=jnp.float32)
    x204 = jax.random.normal(k2, (N, Csq, 1, 1), dtype=jnp.float32)

    # deterministic synthetic parameters (shapes from the module __init__)
    w1 = jax.random.normal(k3, (Cin, Csq, 1, 1), dtype=jnp.float32) * 0.05
    b1 = jax.random.normal(k4, (Cin,), dtype=jnp.float32) * 0.05
    w2 = jax.random.normal(k5, (Cout, Cin, 1, 1), dtype=jnp.float32) * 0.02

    # One-time weight layout / dtype prep (outside the jitted forward).
    w1t, b1r, w2m = prepare_params(w1, b1, w2)

    fwd = jax.jit(se_block)
    out = jax.block_until_ready(fwd(x204, x201, w1t, b1r, w2m))

    ref = reference(x204, x201, w1, b1, w2)
    assert out.shape == (N, Cout, H, W), out.shape
    # bf16 matmul operands with f32 accumulation => ~1e-3-level abs error vs
    # the full-f32 reference; tolerance sized accordingly.
    max_err = float(jnp.max(jnp.abs(out - ref)))
    assert jnp.allclose(out, ref, atol=2e-2, rtol=2e-2), f"max_err={max_err}"

    print("KERNEL_OK")
</pallas_src>

<mosaic_0001>
module attributes {stable_mosaic.version = 11 : i64} {
  func.func @_se_kernel(%arg0: memref<48x1xf32, #tpu.memory_space<vmem>>, %arg1: memref<48x768xf32, #tpu.memory_space<vmem>>, %arg2: memref<1x768xf32, #tpu.memory_space<vmem>>, %arg3: memref<768x196xf32, #tpu.memory_space<vmem>>, %arg4: memref<192x768xbf16, #tpu.memory_space<vmem>>, %arg5: memref<192x196xf32, #tpu.memory_space<vmem>>) attributes {dimension_semantics = [], scalar_prefetch = 0 : i64, scratch_operands = 0 : i64, tpu.core_type = #tpu.core_type<tc>} {
    %c0 = arith.constant 0 : index
    %c0_0 = arith.constant 0 : index
    %0 = vector.load %arg1[%c0, %c0_0] : memref<48x768xf32, #tpu.memory_space<vmem>>, vector<48x768xf32>
    %c0_1 = arith.constant 0 : index
    %c0_2 = arith.constant 0 : index
    %1 = vector.load %arg0[%c0_1, %c0_2] : memref<48x1xf32, #tpu.memory_space<vmem>>, vector<48x1xf32>
    %2 = vector.broadcast %1 : vector<48x1xf32> to vector<48x768xf32>
    %3 = arith.mulf %0, %2 : vector<48x768xf32>
    %cst = arith.constant dense<0.000000e+00> : vector<768xf32>
    %4 = vector.multi_reduction <add>, %3, %cst [0] : vector<48x768xf32> to vector<768xf32>
    %5 = vector.shape_cast %4 : vector<768xf32> to vector<1x768xf32>
    %c0_3 = arith.constant 0 : index
    %c0_4 = arith.constant 0 : index
    %6 = vector.load %arg2[%c0_3, %c0_4] : memref<1x768xf32, #tpu.memory_space<vmem>>, vector<1x768xf32>
    %7 = arith.addf %5, %6 : vector<1x768xf32>
    %8 = arith.negf %7 : vector<1x768xf32>
    %9 = math.exp %8 : vector<1x768xf32>
    %cst_5 = arith.constant 1.000000e+00 : f32
    %10 = vector.broadcast %cst_5 : f32 to vector<1x768xf32>
    %11 = arith.addf %10, %9 : vector<1x768xf32>
    %12 = arith.divf %10, %11 : vector<1x768xf32>
    %c0_6 = arith.constant 0 : index
    %c0_7 = arith.constant 0 : index
    %13 = vector.load %arg4[%c0_6, %c0_7] : memref<192x768xbf16, #tpu.memory_space<vmem>>, vector<192x768xbf16>
    %14 = arith.extf %13 : vector<192x768xbf16> to vector<192x768xf32>
    %15 = vector.broadcast %12 : vector<1x768xf32> to vector<192x768xf32>
    %16 = arith.mulf %14, %15 : vector<192x768xf32>
    %17 = arith.truncf %16 : vector<192x768xf32> to vector<192x768xbf16>
    %c0_8 = arith.constant 0 : index
    %c0_9 = arith.constant 0 : index
    %18 = vector.load %arg3[%c0_8, %c0_9] : memref<768x196xf32, #tpu.memory_space<vmem>>, vector<768x196xf32>
    %19 = arith.truncf %18 : vector<768x196xf32> to vector<768x196xbf16>
    %cst_10 = arith.constant dense<0.000000e+00> : vector<192x196xf32>
    %20 = tpu.matmul %17, %19, %cst_10 {dimension_numbers = #tpu.dot_dimension_numbers<[1], [0], [0], [1], [0, 0, 1, 1], [], []>} : vector<192x768xbf16>, vector<768x196xbf16>, vector<192x196xf32> -> vector<192x196xf32>
    %c0_11 = arith.constant 0 : index
    %c0_12 = arith.constant 0 : index
    %21 = vector.load %arg5[%c0_11, %c0_12] : memref<192x196xf32, #tpu.memory_space<vmem>>, vector<192x196xf32>
    tpu.vector_store %arg5[%c0_11, %c0_12], %20 {strides = array<i32>} : memref<192x196xf32, #tpu.memory_space<vmem>>, vector<192x196xf32>,
    return
  }
}

</mosaic_0001>

<bundles_post_ra>
// kernel: se_block.1
= control target key start
LH: loop header
LB: loop body
LE: loop exit
PB: predicated region body
PF: predicated region fallthrough
CT: control target
= control target key end

     0   :  { %v1590_v0 = vmov 0   ;;  %v196_v10 = vlaneseq  ;;  %vm1472_vm0 = vcmask 556032   ;;  %s4306_s0 = inlined_call_operand.vmem [shape: f32[48,1], index: 0, kind: input, shape index: {}]   ;;  %s4307_s3 = inlined_call_operand.vmem [shape: f32[768,196], index: 3, kind: input, shape index: {}]   ;;  %s4308_s2 = inlined_call_operand.vmem [shape: f32[1,768], index: 2, kind: input, shape index: {}]   ;;  %s4309_s4 = inlined_call_operand.vmem [shape: bf16[192,768], index: 4, kind: input, shape index: {}]   ;;  %s4310_s1 = inlined_call_operand.vmem [shape: f32[48,768], index: 1, kind: input, shape index: {}]   ;;  %s4311_s5 = inlined_call_operand.vmem [shape: f32[192,196], index: 5, kind: output, shape index: {}]  }
   0x1   :  { %1564 = vset.pattern.permute.xlu1 %v1590_v0  ;;  %1563 = vset.pattern.permute.xlu0 %v1590_v0  ;;  %v58_v1 = vld [vmem:[%s4306_s0 + $0x10] sm:$0xff]  ;;  %v56_v2 = vld [vmem:[%s4306_s0] sm:$0xff]  ;;  %v59_v3 = vld [vmem:[%s4306_s0 + $0x18] sm:$0xff] }
   0x2   :  { %74 = vperm.xlu1 %1564, %v58_v1   ;;  %64 = vperm.xlu0 %1563, %v56_v2   ;;  %v57_v4 = vld [vmem:[%s4306_s0 + $0x8] sm:$0xff]  ;;  %v60_v6 = vld [vmem:[%s4306_s0 + $0x20] sm:$0xff]  ;;  %v755_v8 = vld [vmem:[%s4307_s3 + $0xf8] sm:$0xff]  ;;  %v1663_v19 = vshrl.u32 %v196_v10, 7 }
   0x3   :  { %v61_v5 = vld [vmem:[%s4306_s0 + $0x28] sm:$0xff]  ;;  %v819_v12 = vld [vmem:[%s4307_s3 + $0x2f8] sm:$0xff]  ;;  %v752_v13 = vld [vmem:[%s4307_s3 + $0xe0] sm:$0xff] }
   0x4   :  { %v753_v7 = vld [vmem:[%s4307_s3 + $0xe8] sm:$0xff]  ;;  %v754_v14 = vld [vmem:[%s4307_s3 + $0xf0] sm:$0xff]  ;;  %v816_v17 = vld [vmem:[%s4307_s3 + $0x2e0] sm:$0xff]  ;;  %v214_v21 = vsub.s32 4, %v1663_v19  ;;  %v218_v22 = vsub.s32 5, %v1663_v19 }
   0x5   :  { %v817_v9 = vld [vmem:[%s4307_s3 + $0x2e8] sm:$0xff]  ;;  %v931_v11 = vpack.c.bf16 %v755_v8, %v753_v7  ;;  %v930_v16 = vpack.c.bf16 %v754_v14, %v752_v13  ;;  %v818_v18 = vld [vmem:[%s4307_s3 + $0x2f0] sm:$0xff]  ;;  %v1670_v23 = vld [vmem:[%s4308_s2] sm:$0x3f] }
   0x6   :  { %79 = vperm.xlu1 %1564, %v59_v3   ;;  %69 = vperm.xlu0 %1563, %v57_v4   ;;  %v963_v15 = vpack.c.bf16 %v819_v12, %v817_v9  ;;  %v962_v20 = vpack.c.bf16 %v818_v18, %v816_v17  ;;  %v749_v24 = vld [vmem:[%s4307_s3 + $0xc8] sm:$0xff]  ;;  %v751_v25 = vld [vmem:[%s4307_s3 + $0xd8] sm:$0xff]  ;;  %v1682_v27 = vrot.slane %v1670_v23, %v214_v21  ;;  %v748_v31 = vld [vmem:[%s4307_s3 + $0xc0] sm:$0xff] }
   0x7   :  { %1012 = vmatprep.subr.bf16.mxu0 %v931_v11  ;;  %v813_v26 = vld [vmem:[%s4307_s3 + $0x2c8] sm:$0xff]  ;;  %v1685_v28 = vrot.slane %v1670_v23, %v218_v22  ;;  %v929_v29 = vpack.c.bf16 %v751_v25, %v749_v24  ;;  %v815_v30 = vld [vmem:[%s4307_s3 + $0x2d8] sm:$0xff]  ;;  %v750_v32 = vld [vmem:[%s4307_s3 + $0xd0] sm:$0xff] }
   0x8   :  { %1165 = vmatprep.subr.bf16.mxu1 %v963_v15  ;;  %1013 = vmatpush1.bf16.msra.mxu0 %v930_v16  ;;  %v961_v33 = vpack.c.bf16 %v815_v30, %v813_v26  ;;  %v928_v34 = vpack.c.bf16 %v750_v32, %v748_v31  ;;  %v812_v35 = vld [vmem:[%s4307_s3 + $0x2c0] sm:$0xff]  ;;  %v814_v36 = vld [vmem:[%s4307_s3 + $0x2d0] sm:$0xff]  ;;  %v745_v37 = vld [vmem:[%s4307_s3 + $0xa8] sm:$0xff] }
   0x9   :  { %1166 = vmatpush1.bf16.msra.mxu1 %v962_v20  ;;  %1014 = vmatprep.subr.bf16.mxu0 %v929_v29  ;;  %v960_v38 = vpack.c.bf16 %v814_v36, %v812_v35  ;;  %v747_v39 = vld [vmem:[%s4307_s3 + $0xb8] sm:$0xff]  ;;  %v809_v40 = vld [vmem:[%s4307_s3 + $0x2a8] sm:$0xff]  ;;  %v744_v44 = vld [vmem:[%s4307_s3 + $0xa0] sm:$0xff] }
   0xa   :  { %89 = vperm.xlu1 %1564, %v61_v5   ;;  %84 = vperm.xlu0 %1563, %v60_v6   ;;  %v811_v41 = vld [vmem:[%s4307_s3 + $0x2b8] sm:$0xff]  ;;  %v927_v42 = vpack.c.bf16 %v747_v39, %v745_v37  ;;  %v746_v45 = vld [vmem:[%s4307_s3 + $0xb0] sm:$0xff]  ;;  %v808_v46 = vld [vmem:[%s4307_s3 + $0x2a0] sm:$0xff] }
   0xb   :  { %1167 = vmatprep.subr.bf16.mxu1 %v961_v33  ;;  %v959_v43 = vpack.c.bf16 %v811_v41, %v809_v40  ;;  %v926_v47 = vpack.c.bf16 %v746_v45, %v744_v44  ;;  %v810_v48 = vld [vmem:[%s4307_s3 + $0x2b0] sm:$0xff]  ;;  %v741_v49 = vld [vmem:[%s4307_s3 + $0x88] sm:$0xff]  ;;  %v743_v50 = vld [vmem:[%s4307_s3 + $0x98] sm:$0xff] }
   0xc   :  { %1015 = vmatpush1.bf16.msra.mxu0 %v928_v34  ;;  %v958_v51 = vpack.c.bf16 %v810_v48, %v808_v46  ;;  %v925_v52 = vpack.c.bf16 %v743_v50, %v741_v49  ;;  %v805_v53 = vld [vmem:[%s4307_s3 + $0x288] sm:$0xff]  ;;  %v807_v54 = vld [vmem:[%s4307_s3 + $0x298] sm:$0xff]  ;;  %v740_v55 = vld [vmem:[%s4307_s3 + $0x80] sm:$0xff] }
   0xd   :  { %1168 = vmatpush1.bf16.msra.mxu1 %v960_v38  ;;  %1016 = vmatprep.subr.bf16.mxu0 %v927_v42  ;;  %v957_v56 = vpack.c.bf16 %v807_v54, %v805_v53  ;;  %v742_v57 = vld [vmem:[%s4307_s3 + $0x90] sm:$0xff]  ;;  %v804_v58 = vld [vmem:[%s4307_s3 + $0x280] sm:$0xff]  ;;  %v737_v61 = vld [vmem:[%s4307_s3 + $0x68] sm:$0xff] }
   0xe   :  { %1169 = vmatprep.subr.bf16.mxu1 %v959_v43  ;;  %v806_v59 = vld [vmem:[%s4307_s3 + $0x290] sm:$0xff]  ;;  %v924_v60 = vpack.c.bf16 %v742_v57, %v740_v55  ;;  %v739_v62 = vld [vmem:[%s4307_s3 + $0x78] sm:$0xff]  ;;  %v801_v63 = vld [vmem:[%s4307_s3 + $0x268] sm:$0xff] }
   0xf   :  { %v956_v0 = vpack.c.bf16 %v806_v59, %v804_v58  ;;  %v923_v1 = vpack.c.bf16 %v739_v62, %v737_v61  ;;  %v803_v2 = vld [vmem:[%s4307_s3 + $0x278] sm:$0xff]  ;;  %v736_v3 = vld [vmem:[%s4307_s3 + $0x60] sm:$0xff]  ;;  %v738_v4 = vld [vmem:[%s4307_s3 + $0x70] sm:$0xff] }
  0x10   :  { %1017 = vmatpush1.bf16.msra.mxu0 %v926_v47  ;;  %v955_v5 = vpack.c.bf16 %v803_v2, %v801_v63  ;;  %v800_v6 = vld [vmem:[%s4307_s3 + $0x260] sm:$0xff]  ;;  %v802_v7 = vld [vmem:[%s4307_s3 + $0x270] sm:$0xff]  ;;  %v733_v8 = vld [vmem:[%s4307_s3 + $0x48] sm:$0xff]  ;;  %v922_v12 = vpack.c.bf16 %v738_v4, %v736_v3 }
  0x11   :  { %1170 = vmatpush1.bf16.msra.mxu1 %v958_v51  ;;  %1018 = vmatprep.subr.bf16.mxu0 %v925_v52  ;;  %v735_v9 = vld [vmem:[%s4307_s3 + $0x58] sm:$0xff]  ;;  %v797_v10 = vld [vmem:[%s4307_s3 + $0x248] sm:$0xff]  ;;  %v954_v13 = vpack.c.bf16 %v802_v7, %v800_v6  ;;  %v732_v15 = vld [vmem:[%s4307_s3 + $0x40] sm:$0xff] }
  0x12   :  { %1171 = vmatprep.subr.bf16.mxu1 %v957_v56  ;;  %v799_v11 = vld [vmem:[%s4307_s3 + $0x258] sm:$0xff]  ;;  %v921_v14 = vpack.c.bf16 %v735_v9, %v733_v8  ;;  %v734_v16 = vld [vmem:[%s4307_s3 + $0x50] sm:$0xff]  ;;  %v796_v17 = vld [vmem:[%s4307_s3 + $0x240] sm:$0xff] }
  0x13   :  { %v953_v18 = vpack.c.bf16 %v799_v11, %v797_v10  ;;  %v798_v20 = vld [vmem:[%s4307_s3 + $0x250] sm:$0xff]  ;;  %v729_v21 = vld [vmem:[%s4307_s3 + $0x28] sm:$0xff]  ;;  %v731_v22 = vld [vmem:[%s4307_s3 + $0x38] sm:$0xff]  ;;  %v920_v26 = vpack.c.bf16 %v734_v16, %v732_v15 }
  0x14   :  { %1019 = vmatpush1.bf16.msra.mxu0 %v924_v60  ;;  %v793_v24 = vld [vmem:[%s4307_s3 + $0x228] sm:$0xff]  ;;  %v795_v25 = vld [vmem:[%s4307_s3 + $0x238] sm:$0xff]  ;;  %v952_v29 = vpack.c.bf16 %v798_v20, %v796_v17  ;;  %v919_v30 = vpack.c.bf16 %v731_v22, %v729_v21  ;;  %v728_v31 = vld [vmem:[%s4307_s3 + $0x20] sm:$0xff] }
  0x15   :  { %1172 = vmatpush1.bf16.msra.mxu1 %v956_v0  ;;  %1020 = vmatprep.subr.bf16.mxu0 %v923_v1  ;;  %v730_v32 = vld [vmem:[%s4307_s3 + $0x30] sm:$0xff]  ;;  %v792_v33 = vld [vmem:[%s4307_s3 + $0x220] sm:$0xff]  ;;  %v951_v34 = vpack.c.bf16 %v795_v25, %v793_v24  ;;  %v725_v36 = vld [vmem:[%s4307_s3 + $0x8] sm:$0xff] }
  0x16   :  { %1173 = vmatprep.subr.bf16.mxu1 %v955_v5  ;;  %v794_v35 = vld [vmem:[%s4307_s3 + $0x230] sm:$0xff]  ;;  %v727_v37 = vld [vmem:[%s4307_s3 + $0x18] sm:$0xff]  ;;  %v789_v38 = vld [vmem:[%s4307_s3 + $0x208] sm:$0xff]  ;;  %v918_v40 = vpack.c.bf16 %v730_v32, %v728_v31 }
  0x17   :  { %v791_v39 = vld [vmem:[%s4307_s3 + $0x218] sm:$0xff]  ;;  %v950_v41 = vpack.c.bf16 %v794_v35, %v792_v33  ;;  %v917_v42 = vpack.c.bf16 %v727_v37, %v725_v36  ;;  %v724_v43 = vld [vmem:[%s4307_s3] sm:$0xff]  ;;  %v726_v44 = vld [vmem:[%s4307_s3 + $0x10] sm:$0xff] }
  0x18   :  { %1021 = vmatpush1.bf16.msra.mxu0 %v922_v12  ;;  %v788_v45 = vld [vmem:[%s4307_s3 + $0x200] sm:$0xff]  ;;  %v949_v46 = vpack.c.bf16 %v791_v39, %v789_v38  ;;  %v790_v47 = vld [vmem:[%s4307_s3 + $0x210] sm:$0xff]  ;;  %v785_v48 = vld [vmem:[%s4307_s3 + $0x1e8] sm:$0xff]  ;;  %v916_v52 = vpack.c.bf16 %v726_v44, %v724_v43 }
  0x19   :  { %1174 = vmatpush1.bf16.msra.mxu1 %v954_v13  ;;  %1022 = vmatprep.subr.bf16.mxu0 %v921_v14  ;;  %v787_v49 = vld [vmem:[%s4307_s3 + $0x1f8] sm:$0xff]  ;;  %v849_v50 = vld [vmem:[%s4307_s3 + $0x3e8] sm:$0xff]  ;;  %v948_v53 = vpack.c.bf16 %v790_v47, %v788_v45  ;;  %v784_v55 = vld [vmem:[%s4307_s3 + $0x1e0] sm:$0xff] }
  0x1a   :  { %1175 = vmatprep.subr.bf16.mxu1 %v953_v18  ;;  %v851_v51 = vld [vmem:[%s4307_s3 + $0x3f8] sm:$0xff]  ;;  %v947_v54 = vpack.c.bf16 %v787_v49, %v785_v48  ;;  %v786_v56 = vld [vmem:[%s4307_s3 + $0x1f0] sm:$0xff]  ;;  %v848_v57 = vld [vmem:[%s4307_s3 + $0x3e0] sm:$0xff] }
  0x1b   :  { %v979_v58 = vpack.c.bf16 %v851_v51, %v849_v50  ;;  %v850_v59 = vld [vmem:[%s4307_s3 + $0x3f0] sm:$0xff]  ;;  %v781_v60 = vld [vmem:[%s4307_s3 + $0x1c8] sm:$0xff]  ;;  %v783_v61 = vld [vmem:[%s4307_s3 + $0x1d8] sm:$0xff]  ;;  %v946_v0 = vpack.c.bf16 %v786_v56, %v784_v55 }
  0x1c   :  { %1023 = vmatpush1.bf16.msra.mxu0 %v920_v26  ;;  %v845_v62 = vld [vmem:[%s4307_s3 + $0x3c8] sm:$0xff]  ;;  %v847_v63 = vld [vmem:[%s4307_s3 + $0x3d8] sm:$0xff]  ;;  %v978_v1 = vpack.c.bf16 %v850_v59, %v848_v57  ;;  %v945_v2 = vpack.c.bf16 %v783_v61, %v781_v60  ;;  %v780_v3 = vld [vmem:[%s4307_s3 + $0x1c0] sm:$0xff] }
  0x1d   :  { %1176 = vmatpush1.bf16.msra.mxu1 %v952_v29  ;;  %1024 = vmatprep.subr.bf16.mxu0 %v919_v30  ;;  %v782_v4 = vld [vmem:[%s4307_s3 + $0x1d0] sm:$0xff]  ;;  %v844_v5 = vld [vmem:[%s4307_s3 + $0x3c0] sm:$0xff]  ;;  %v977_v6 = vpack.c.bf16 %v847_v63, %v845_v62  ;;  %v777_v8 = vld [vmem:[%s4307_s3 + $0x1a8] sm:$0xff] }
  0x1e   :  { %1177 = vmatprep.subr.bf16.mxu1 %v951_v34  ;;  %v846_v7 = vld [vmem:[%s4307_s3 + $0x3d0] sm:$0xff]  ;;  %v779_v9 = vld [vmem:[%s4307_s3 + $0x1b8] sm:$0xff]  ;;  %v841_v10 = vld [vmem:[%s4307_s3 + $0x3a8] sm:$0xff]  ;;  %v944_v12 = vpack.c.bf16 %v782_v4, %v780_v3 }
  0x1f   :  { %v843_v11 = vld [vmem:[%s4307_s3 + $0x3b8] sm:$0xff]  ;;  %v976_v13 = vpack.c.bf16 %v846_v7, %v844_v5  ;;  %v943_v14 = vpack.c.bf16 %v779_v9, %v777_v8  ;;  %v776_v15 = vld [vmem:[%s4307_s3 + $0x1a0] sm:$0xff]  ;;  %v778_v16 = vld [vmem:[%s4307_s3 + $0x1b0] sm:$0xff] }
  0x20   :  { %1025 = vmatpush1.bf16.msra.mxu0 %v918_v40  ;;  %v840_v17 = vld [vmem:[%s4307_s3 + $0x3a0] sm:$0xff]  ;;  %v975_v18 = vpack.c.bf16 %v843_v11, %v841_v10  ;;  %v842_v20 = vld [vmem:[%s4307_s3 + $0x3b0] sm:$0xff]  ;;  %v773_v21 = vld [vmem:[%s4307_s3 + $0x188] sm:$0xff]  ;;  %v942_v26 = vpack.c.bf16 %v778_v16, %v776_v15 }
  0x21   :  { %1178 = vmatpush1.bf16.msra.mxu1 %v950_v41  ;;  %1026 = vmatprep.subr.bf16.mxu0 %v917_v42  ;;  %v775_v22 = vld [vmem:[%s4307_s3 + $0x198] sm:$0xff]  ;;  %v837_v24 = vld [vmem:[%s4307_s3 + $0x388] sm:$0xff]  ;;  %v974_v29 = vpack.c.bf16 %v842_v20, %v840_v17  ;;  %v772_v31 = vld [vmem:[%s4307_s3 + $0x180] sm:$0xff] }
  0x22   :  { %1179 = vmatprep.subr.bf16.mxu1 %v949_v46  ;;  %v839_v25 = vld [vmem:[%s4307_s3 + $0x398] sm:$0xff]  ;;  %v941_v30 = vpack.c.bf16 %v775_v22, %v773_v21  ;;  %v774_v32 = vld [vmem:[%s4307_s3 + $0x190] sm:$0xff]  ;;  %v836_v33 = vld [vmem:[%s4307_s3 + $0x380] sm:$0xff] }
  0x23   :  { %v973_v34 = vpack.c.bf16 %v839_v25, %v837_v24  ;;  %v838_v35 = vld [vmem:[%s4307_s3 + $0x390] sm:$0xff]  ;;  %v769_v36 = vld [vmem:[%s4307_s3 + $0x168] sm:$0xff]  ;;  %v771_v37 = vld [vmem:[%s4307_s3 + $0x178] sm:$0xff]  ;;  %v940_v40 = vpack.c.bf16 %v774_v32, %v772_v31  ;;  %v206_v31 = vsub.s32 2, %v1663_v19  ;;  %v210_v32 = vsub.s32 3, %v1663_v19 }
  0x24   :  { %1027 = vmatpush1.bf16.msra.mxu0 %v916_v52  ;;  %v833_v38 = vld [vmem:[%s4307_s3 + $0x368] sm:$0xff]  ;;  %v835_v39 = vld [vmem:[%s4307_s3 + $0x378] sm:$0xff]  ;;  %v972_v41 = vpack.c.bf16 %v838_v35, %v836_v33  ;;  %v939_v42 = vpack.c.bf16 %v771_v37, %v769_v36  ;;  %v768_v43 = vld [vmem:[%s4307_s3 + $0x160] sm:$0xff] }
  0x25   :  { %1180 = vmatpush1.bf16.msra.mxu1 %v948_v53  ;;  %1028 = vmatprep.subr.bf16.mxu0 %v947_v54  ;;  %v770_v44 = vld [vmem:[%s4307_s3 + $0x170] sm:$0xff]  ;;  %v832_v45 = vld [vmem:[%s4307_s3 + $0x360] sm:$0xff]  ;;  %v971_v46 = vpack.c.bf16 %v835_v39, %v833_v38  ;;  %v765_v48 = vld [vmem:[%s4307_s3 + $0x148] sm:$0xff] }
  0x26   :  { %1181 = vmatprep.subr.bf16.mxu1 %v979_v58  ;;  %v834_v47 = vld [vmem:[%s4307_s3 + $0x370] sm:$0xff]  ;;  %v767_v49 = vld [vmem:[%s4307_s3 + $0x158] sm:$0xff]  ;;  %v829_v50 = vld [vmem:[%s4307_s3 + $0x348] sm:$0xff]  ;;  %v938_v52 = vpack.c.bf16 %v770_v44, %v768_v43 }
  0x27   :  { %v831_v51 = vld [vmem:[%s4307_s3 + $0x358] sm:$0xff]  ;;  %v970_v53 = vpack.c.bf16 %v834_v47, %v832_v45  ;;  %v937_v54 = vpack.c.bf16 %v767_v49, %v765_v48  ;;  %v764_v55 = vld [vmem:[%s4307_s3 + $0x140] sm:$0xff]  ;;  %v766_v56 = vld [vmem:[%s4307_s3 + $0x150] sm:$0xff]  ;;  %v2100_v48 = vrot.slane %v1670_v23, %v206_v31  ;;  %v2103_v49 = vrot.slane %v1670_v23, %v210_v32 }
  0x28   :  { %1029 = vmatpush2.bf16.msra.mxu0 %v946_v0  ;;  %v828_v57 = vld [vmem:[%s4307_s3 + $0x340] sm:$0xff]  ;;  %v969_v58 = vpack.c.bf16 %v831_v51, %v829_v50  ;;  %v830_v59 = vld [vmem:[%s4307_s3 + $0x350] sm:$0xff]  ;;  %v761_v60 = vld [vmem:[%s4307_s3 + $0x128] sm:$0xff]  ;;  %v936_v0 = vpack.c.bf16 %v766_v56, %v764_v55 }
  0x29   :  { %1182 = vmatpush2.bf16.msra.mxu1 %v978_v1  ;;  %1030 = vmatprep.subr.bf16.mxu0 %v945_v2  ;;  %v763_v61 = vld [vmem:[%s4307_s3 + $0x138] sm:$0xff]  ;;  %v825_v62 = vld [vmem:[%s4307_s3 + $0x328] sm:$0xff]  ;;  %v968_v1 = vpack.c.bf16 %v830_v59, %v828_v57  ;;  %v760_v3 = vld [vmem:[%s4307_s3 + $0x120] sm:$0xff] }
  0x2a   :  { %1183 = vmatprep.subr.bf16.mxu1 %v977_v6  ;;  %v827_v63 = vld [vmem:[%s4307_s3 + $0x338] sm:$0xff]  ;;  %v935_v2 = vpack.c.bf16 %v763_v61, %v761_v60  ;;  %v762_v4 = vld [vmem:[%s4307_s3 + $0x130] sm:$0xff]  ;;  %v824_v5 = vld [vmem:[%s4307_s3 + $0x320] sm:$0xff] }
  0x2b   :  { %v967_v6 = vpack.c.bf16 %v827_v63, %v825_v62  ;;  %v826_v7 = vld [vmem:[%s4307_s3 + $0x330] sm:$0xff]  ;;  %v757_v8 = vld [vmem:[%s4307_s3 + $0x108] sm:$0xff]  ;;  %v759_v9 = vld [vmem:[%s4307_s3 + $0x118] sm:$0xff] }
  0x2c   :  { %1031 = vmatpush2.bf16.msra.mxu0 %v944_v12  ;;  %v821_v10 = vld [vmem:[%s4307_s3 + $0x308] sm:$0xff]  ;;  %v823_v11 = vld [vmem:[%s4307_s3 + $0x318] sm:$0xff]  ;;  %v934_v12 = vpack.c.bf16 %v762_v4, %v760_v3  ;;  %v756_v15 = vld [vmem:[%s4307_s3 + $0x100] sm:$0xff] }
  0x2d   :  { %1184 = vmatpush2.bf16.msra.mxu1 %v976_v13  ;;  %1032 = vmatprep.subr.bf16.mxu0 %v943_v14  ;;  %v966_v13 = vpack.c.bf16 %v826_v7, %v824_v5  ;;  %v933_v14 = vpack.c.bf16 %v759_v9, %v757_v8  ;;  %v758_v16 = vld [vmem:[%s4307_s3 + $0x110] sm:$0xff]  ;;  %v820_v17 = vld [vmem:[%s4307_s3 + $0x300] sm:$0xff]  ;;  %v881_v21 = vld [vmem:[%s4307_s3 + $0x4e8] sm:$0xff] }
  0x2e   :  { %1185 = vmatprep.subr.bf16.mxu1 %v975_v18  ;;  %v965_v18 = vpack.c.bf16 %v823_v11, %v821_v10  ;;  %v822_v20 = vld [vmem:[%s4307_s3 + $0x310] sm:$0xff]  ;;  %v883_v22 = vld [vmem:[%s4307_s3 + $0x4f8] sm:$0xff]  ;;  %v932_v24 = vpack.c.bf16 %v758_v16, %v756_v15  ;;  %v2053_v33 = vld [vmem:[%s4309_s4] sm:$0xff] }
  0x2f   :  { %v964_v25 = vpack.c.bf16 %v822_v20, %v820_v17  ;;  %v2063_v35 = vld [vmem:[%s4309_s4 + $0x8] sm:$0xff]  ;;  %v32_v36 = vld [vmem:[%s4310_s1 + $0x60] sm:$0xff]  ;;  %v34_v37 = vld [vmem:[%s4310_s1 + $0x70] sm:$0xff] }
  0x30   :  { %1033 = vmatpush2.bf16.msra.mxu0 %v942_v26  ;;  %v995_v26 = vpack.c.bf16 %v883_v22, %v881_v21  ;;  %v35_v38 = vld [vmem:[%s4310_s1 + $0x78] sm:$0xff]  ;;  %v36_v39 = vld [vmem:[%s4310_s1 + $0x80] sm:$0xff]  ;;  %v25_v45 = vld [vmem:[%s4310_s1 + $0x28] sm:$0xff] }
  0x31   :  { %1186 = vmatpush2.bf16.msra.mxu1 %v974_v29  ;;  %1034 = vmatprep.subr.bf16.mxu0 %v941_v30  ;;  %v2045_v29 = vsub.s32 0, %v1663_v19  ;;  %v202_v30 = vsub.s32 1, %v1663_v19  ;;  %v33_v19 = vld [vmem:[%s4310_s1 + $0x68] sm:$0xff]  ;;  %v24_v44 = vld [vmem:[%s4310_s1 + $0x20] sm:$0xff]  ;;  %v2109_v51 = vld [vmem:[%s4309_s4 + $0x30] sm:$0xff] }
  0x32   :  { %1187 = vmatprep.subr.bf16.mxu1 %v973_v34  ;;  %v2058_v34 = vld [vmem:[%s4309_s4 + $0x18] sm:$0xff]  ;;  %v42_v62 = vld [vmem:[%s4310_s1 + $0xb0] sm:$0xff]  ;;  %v2522_v55 = vld [vmem:[%s4309_s4 + $0x1e0] sm:$0xff] }
  0x33   :  { %v2097_v47 = vrot.slane %v1670_v23, %v202_v30  ;;  %v23_v61 = vld [vmem:[%s4310_s1 + $0x18] sm:$0xff]  ;;  %v26_v4 = vld [vmem:[%s4310_s1 + $0x30] sm:$0xff]  ;;  %4453 = vst [vmem:[#allocation22_spill] sm:$0xff] %v2522_v55  ;;  %v861_v50 = vld [vmem:[%s4307_s3 + $0x448] sm:$0xff] }
  0x34   :  { %1035 = vmatpush2.bf16.msra.mxu0 %v940_v40  ;;  %v37_v40 = vld [vmem:[%s4310_s1 + $0x88] sm:$0xff]  ;;  %v43_v63 = vld [vmem:[%s4310_s1 + $0xb8] sm:$0xff]  ;;  %v30_v15 = vld [vmem:[%s4310_s1 + $0x50] sm:$0xff] }
  0x35   :  { %1188 = vmatpush2.bf16.msra.mxu1 %v972_v41  ;;  %1036 = vmatprep.subr.bf16.mxu0 %v939_v42  ;;  %v199_v41 = vrot.slane %v1670_v23, %v2045_v29  ;;  %v2088_v42 = vld [vmem:[%s4309_s4 + $0x20] sm:$0xff]  ;;  %v27_v5 = vld [vmem:[%s4310_s1 + $0x38] sm:$0xff]  ;;  %v2674_v55 = vld [vmem:[%s4309_s4 + $0x190] sm:$0xff] }
  0x36   :  { %1189 = vmatprep.subr.bf16.mxu1 %v971_v46  ;;  %v31_v16 = vld [vmem:[%s4310_s1 + $0x58] sm:$0xff]  ;;  %v860_v57 = vld [vmem:[%s4307_s3 + $0x440] sm:$0xff] }
  0x38   :  { %1037 = vmatpush2.bf16.msra.mxu0 %v938_v52  ;;  %v20_v52 = vld [vmem:[%s4310_s1] sm:$0xff] }
  0x39   :  { %1190 = vmatpush2.bf16.msra.mxu1 %v970_v53  ;;  %1038 = vmatprep.subr.bf16.mxu0 %v937_v54  ;;  %v21_v53 = vld [vmem:[%s4310_s1 + $0x8] sm:$0xff]  ;;  %v22_v54 = vld [vmem:[%s4310_s1 + $0x10] sm:$0xff] }
  0x3a   :  { %1191 = vmatprep.subr.bf16.mxu1 %v969_v58  ;;  %v2546_v58 = vld [vmem:[%s4309_s4 + $0x200] sm:$0xff] }
  0x3b   :  { %4456 = vst [vmem:[#allocation25_spill] sm:$0xff] %v2546_v58  ;;  %v2669_v58 = vld [vmem:[%s4309_s4 + $0x88] sm:$0xff] }
  0x3c   :  { %1039 = vmatpush2.bf16.msra.mxu0 %v936_v0  ;;  %v2484_v0 = vld [vmem:[%s4309_s4 + $0x1a0] sm:$0xff] }
  0x3d   :  { %1192 = vmatpush2.bf16.msra.mxu1 %v968_v1  ;;  %1040 = vmatprep.subr.bf16.mxu0 %v935_v2  ;;  %4447 = vst [vmem:[#allocation16_spill] sm:$0xff] %v2484_v0  ;;  %v2572_v1 = vld [vmem:[%s4309_s4 + $0x228] sm:$0xff] }
  0x3e   :  { %1193 = vmatprep.subr.bf16.mxu1 %v967_v6  ;;  %v28_v6 = vld [vmem:[%s4310_s1 + $0x40] sm:$0xff]  ;;  %4458 = vst [vmem:[#allocation27_spill] sm:$0xff] %v2572_v1  ;;  %v857_v0 = vld [vmem:[%s4307_s3 + $0x428] sm:$0xff] }
  0x3f   :  { %v892_v1 = vld [vmem:[%s4307_s3 + $0x540] sm:$0xff] }
  0x40   :  { %1041 = vmatpush2.bf16.msra.mxu0 %v934_v12 }
  0x41   :  { %1194 = vmatpush2.bf16.msra.mxu1 %v966_v13  ;;  %1042 = vmatprep.subr.bf16.mxu0 %v933_v14  ;;  %v29_v14 = vld [vmem:[%s4310_s1 + $0x48] sm:$0xff] }
  0x42   :  { %1195 = vmatprep.subr.bf16.mxu1 %v965_v18 }
  0x44   :  { %1043 = vmatpush2.bf16.msra.mxu0 %v932_v24  ;;  %v38_v24 = vld [vmem:[%s4310_s1 + $0x90] sm:$0xff] }
  0x45   :  { %1196 = vmatpush2.bf16.msra.mxu1 %v964_v25  ;;  %1318 = vmatprep.subr.bf16.mxu0 %v995_v26  ;;  %v39_v25 = vld [vmem:[%s4310_s1 + $0x98] sm:$0xff] }
  0x46   :  { %1530 = vmatprep.subr.bf16.mxu1 %v995_v26  ;;  %v40_v26 = vld [vmem:[%s4310_s1 + $0xa0] sm:$0xff] }
  0x7d   :  { %v75_v43 = vpop.permute.xlu1 %74  ;;  %v65_v46 = vpop.permute.xlu0 %64 }
  0x7e   :  { %v2124_v59 = vmul.f32 %v75_v43, %v36_v39  ;;  %v2126_v60 = vmul.f32 %v75_v43, %v37_v40  ;;  %v96_v2 = vmul.f32 %v65_v46, %v24_v44  ;;  %v97_v3 = vmul.f32 %v65_v46, %v25_v45  ;;  %v51_v44 = vld [vmem:[%s4310_s1 + $0xf8] sm:$0xff] }
  0x7f   :  { %v104_v9 = vmul.f32 %v75_v43, %v32_v36  ;;  %v105_v10 = vmul.f32 %v75_v43, %v33_v19  ;;  %v106_v11 = vmul.f32 %v75_v43, %v34_v37  ;;  %v107_v12 = vmul.f32 %v75_v43, %v35_v38  ;;  %v41_v19 = vld [vmem:[%s4310_s1 + $0xa8] sm:$0xff]  ;;  %v50_v43 = vld [vmem:[%s4310_s1 + $0xf0] sm:$0xff] }
  0x80   :  { %v92_v18 = vmul.f32 %v65_v46, %v20_v52  ;;  %v93_v20 = vmul.f32 %v65_v46, %v21_v53  ;;  %v94_v21 = vmul.f32 %v65_v46, %v22_v54  ;;  %v95_v22 = vmul.f32 %v65_v46, %v23_v61  ;;  %v54_v54 = vld [vmem:[%s4310_s1 + $0x110] sm:$0xff]  ;;  %v55_v61 = vld [vmem:[%s4310_s1 + $0x118] sm:$0xff] }
  0x81   :  { %v80_v13 = vpop.permute.xlu1 %79  ;;  %v70_v17 = vpop.permute.xlu0 %69 }
  0x82   :  { %v114_v30 = vmul.f32 %v80_v13, %v42_v62  ;;  %v115_v31 = vmul.f32 %v80_v13, %v43_v63  ;;  %v98_v32 = vmul.f32 %v70_v17, %v26_v4  ;;  %v99_v36 = vmul.f32 %v70_v17, %v27_v5 }
  0x83   :  { %v100_v37 = vmul.f32 %v70_v17, %v28_v6  ;;  %v101_v38 = vmul.f32 %v70_v17, %v29_v14  ;;  %v102_v39 = vmul.f32 %v70_v17, %v30_v15  ;;  %v103_v40 = vmul.f32 %v70_v17, %v31_v16 }
  0x84   :  { %v110_v45 = vmul.f32 %v80_v13, %v38_v24  ;;  %v111_v46 = vmul.f32 %v80_v13, %v39_v25  ;;  %v128_v52 = vadd.f32 %v98_v32, %v92_v18  ;;  %v139_v53 = vadd.f32 %v99_v36, %v93_v20  ;;  %v44_v18 = vld [vmem:[%s4310_s1 + $0xc0] sm:$0xff]  ;;  %v45_v20 = vld [vmem:[%s4310_s1 + $0xc8] sm:$0xff] }
  0x85   :  { %v90_v62 = vpop.permute.xlu1 %89  ;;  %v150_v63 = vadd.f32 %v100_v37, %v94_v21  ;;  %v161_v4 = vadd.f32 %v101_v38, %v95_v22  ;;  %v172_v5 = vadd.f32 %v102_v39, %v96_v2  ;;  %v183_v6 = vadd.f32 %v103_v40, %v97_v3  ;;  %v85_v24 = vpop.permute.xlu0 %84  ;;  %v46_v2 = vld [vmem:[%s4310_s1 + $0xd0] sm:$0xff]  ;;  %v48_v22 = vld [vmem:[%s4310_s1 + $0xe0] sm:$0xff] }
  0x86   :  { %v112_v14 = vmul.f32 %v80_v13, %v40_v26  ;;  %v113_v15 = vmul.f32 %v80_v13, %v41_v19  ;;  %v122_v16 = vmul.f32 %v90_v62, %v50_v43  ;;  %v123_v17 = vmul.f32 %v90_v62, %v51_v44  ;;  %v47_v13 = vld [vmem:[%s4310_s1 + $0xd8] sm:$0xff]  ;;  %v49_v26 = vld [vmem:[%s4310_s1 + $0xe8] sm:$0xff] }
  0x87   :  { %v126_v25 = vmul.f32 %v90_v62, %v54_v54  ;;  %v127_v32 = vmul.f32 %v90_v62, %v55_v61  ;;  %v129_v3 = vadd.f32 %v128_v52, %v104_v9  ;;  %v140_v21 = vadd.f32 %v139_v53, %v105_v10  ;;  %v52_v9 = vld [vmem:[%s4310_s1 + $0x100] sm:$0xff]  ;;  %v53_v10 = vld [vmem:[%s4310_s1 + $0x108] sm:$0xff] }
  0x88   :  { %v151_v36 = vadd.f32 %v150_v63, %v106_v11  ;;  %v162_v19 = vadd.f32 %v161_v4, %v107_v12  ;;  %v173_v37 = vadd.f32 %v172_v5, %v2124_v59  ;;  %v184_v38 = vadd.f32 %v183_v6, %v2126_v60  ;;  %v2212_v63 = vld [vmem:[%s4309_s4 + $0x48] sm:$0xff] }
  0x89   :  { %v130_v39 = vadd.f32 %v129_v3, %v110_v45  ;;  %v141_v40 = vadd.f32 %v140_v21, %v111_v46  ;;  %v116_v43 = vmul.f32 %v85_v24, %v44_v18  ;;  %v117_v44 = vmul.f32 %v85_v24, %v45_v20  ;;  %v2217_v45 = vld [vmem:[%s4309_s4 + $0x38] sm:$0xff]  ;;  %v2222_v18 = vld [vmem:[%s4309_s4 + $0x50] sm:$0xff] }
  0x8a   :  { %v152_v52 = vadd.f32 %v151_v36, %v112_v14  ;;  %v163_v53 = vadd.f32 %v162_v19, %v113_v15  ;;  %v174_v11 = vadd.f32 %v173_v37, %v114_v30  ;;  %v185_v12 = vadd.f32 %v184_v38, %v115_v31  ;;  %v865_v19 = vld [vmem:[%s4307_s3 + $0x468] sm:$0xff]  ;;  %v867_v3 = vld [vmem:[%s4307_s3 + $0x478] sm:$0xff] }
  0x8b   :  { %v118_v54 = vmul.f32 %v85_v24, %v46_v2  ;;  %v119_v59 = vmul.f32 %v85_v24, %v47_v13  ;;  %v120_v61 = vmul.f32 %v85_v24, %v48_v22  ;;  %v121_v60 = vmul.f32 %v85_v24, %v49_v26 }
  0x8c   :  { %v124_v46 = vmul.f32 %v90_v62, %v52_v9  ;;  %v125_v4 = vmul.f32 %v90_v62, %v53_v10  ;;  %v131_v5 = vadd.f32 %v130_v39, %v116_v43  ;;  %v142_v6 = vadd.f32 %v141_v40, %v117_v44  ;;  %v870_v40 = vld [vmem:[%s4307_s3 + $0x490] sm:$0xff]  ;;  %v2503_v43 = vld [vmem:[%s4309_s4 + $0x1b8] sm:$0xff] }
  0x8d   :  { %v153_v30 = vadd.f32 %v152_v52, %v118_v54  ;;  %v164_v31 = vadd.f32 %v163_v53, %v119_v59  ;;  %v175_v14 = vadd.f32 %v174_v11, %v120_v61  ;;  %v186_v15 = vadd.f32 %v185_v12, %v121_v60  ;;  %v2239_v12 = vld [vmem:[%s4309_s4 + $0x60] sm:$0xff]  ;;  %v877_v60 = vld [vmem:[%s4307_s3 + $0x4c8] sm:$0xff]  ;;  %4450 = vst [vmem:[#allocation19_spill] sm:$0xff] %v2503_v43 }
  0x8e   :  { %v132_v20 = vadd.f32 %v131_v5, %v122_v16  ;;  %v143_v24 = vadd.f32 %v142_v6, %v123_v17  ;;  %v880_v16 = vld [vmem:[%s4307_s3 + $0x4e0] sm:$0xff]  ;;  %v882_v17 = vld [vmem:[%s4307_s3 + $0x4f0] sm:$0xff] }
  0x8f   :  { %v154_v21 = vadd.f32 %v153_v30, %v124_v46  ;;  %v165_v13 = vadd.f32 %v164_v31, %v125_v4  ;;  %v176_v62 = vadd.f32 %v175_v14, %v126_v25  ;;  %v187_v22 = vadd.f32 %v186_v15, %v127_v32  ;;  %v879_v31 = vld [vmem:[%s4307_s3 + $0x4d8] sm:$0xff]  ;;  %v2508_v46 = vld [vmem:[%s4309_s4 + $0x1d0] sm:$0xff]  ;;  %v2623_v43 = vld [vmem:[%s4309_s4 + $0x40] sm:$0xff] }
  0x90   :  { %v133_v26 = vrot.slane %v132_v20, 4  ;;  %v144_v36 = vrot.slane %v143_v24, 4  ;;  %v2241_v61 = vpack.c.bf16 %v882_v17, %v880_v16  ;;  %v2253_v14 = vld [vmem:[%s4309_s4 + $0x78] sm:$0xff]  ;;  %4451 = vst [vmem:[#allocation20_spill] sm:$0xff] %v2508_v46  ;;  %v2604_v46 = vld [vmem:[%s4309_s4 + $0x130] sm:$0xff]  ;;  %4468 = vst [vmem:[#allocation37_spill] sm:$0xff] %v2623_v43 }
  0x91   :  { %v155_v38 = vrot.slane %v154_v21, 4  ;;  %v166_v9 = vrot.slane %v165_v13, 4  ;;  %v177_v10 = vrot.slane %v176_v62, 4  ;;  %v188_v39 = vrot.slane %v187_v22, 4  ;;  %4464 = vst [vmem:[#allocation33_spill] sm:$0xff] %v2604_v46  ;;  %v905_v46 = vld [vmem:[%s4307_s3 + $0x5a8] sm:$0xff] }
  0x92   :  { %v134_v25 = vadd.f32 %v133_v26, %v132_v20  ;;  %v145_v32 = vadd.f32 %v144_v36, %v143_v24  ;;  %v876_v36 = vld [vmem:[%s4307_s3 + $0x4c0] sm:$0xff]  ;;  %v2489_v24 = vld [vmem:[%s4309_s4 + $0x1b0] sm:$0xff]  ;;  %v903_v43 = vld [vmem:[%s4307_s3 + $0x598] sm:$0xff] }
  0x93   :  { %v156_v44 = vadd.f32 %v155_v38, %v154_v21  ;;  %v167_v52 = vadd.f32 %v166_v9, %v165_v13  ;;  %v178_v53 = vadd.f32 %v177_v10, %v176_v62  ;;  %v189_v11 = vadd.f32 %v188_v39, %v187_v22  ;;  %v878_v38 = vld [vmem:[%s4307_s3 + $0x4d0] sm:$0xff]  ;;  %4448 = vst [vmem:[#allocation17_spill] sm:$0xff] %v2489_v24  ;;  %v2581_v24 = vld [vmem:[%s4309_s4 + $0x218] sm:$0xff] }
  0x94   :  { %v135_v54 = vrot.slane %v134_v25, 2  ;;  %v146_v59 = vrot.slane %v145_v32, 2  ;;  %v2263_v39 = vpack.c.bf16 %v879_v31, %v877_v60  ;;  %4460 = vst [vmem:[#allocation29_spill] sm:$0xff] %v2581_v24  ;;  %v915_v24 = vld [vmem:[%s4307_s3 + $0x5f8] sm:$0xff] }
  0x95   :  { %v157_v4 = vrot.slane %v156_v44, 2  ;;  %v168_v5 = vrot.slane %v167_v52, 2  ;;  %v179_v6 = vrot.slane %v178_v53, 2  ;;  %v190_v30 = vrot.slane %v189_v11, 2 }
  0x96   :  { %v136_v15 = vadd.f32 %v135_v54, %v134_v25  ;;  %v147_v20 = vadd.f32 %v146_v59, %v145_v32  ;;  %v2271_v54 = vpack.c.bf16 %v878_v38, %v876_v36  ;;  %v2307_v38 = vld [vmem:[%s4309_s4 + $0xb0] sm:$0xff]  ;;  %v2384_v36 = vld [vmem:[%s4309_s4 + $0x120] sm:$0xff] }
  0x97   :  { %v158_v13 = vadd.f32 %v157_v4, %v156_v44  ;;  %v169_v62 = vadd.f32 %v168_v5, %v167_v52  ;;  %v180_v22 = vadd.f32 %v179_v6, %v178_v53  ;;  %v191_v26 = vadd.f32 %v190_v30, %v189_v11  ;;  %v2269_v52 = vld [vmem:[%s4309_s4 + $0x68] sm:$0xff]  ;;  %v2277_v30 = vld [vmem:[%s4309_s4 + $0x80] sm:$0xff]  ;;  %4436 = vst [vmem:[#allocation5_spill] sm:$0xff] %v2384_v36 }
  0x98   :  { %v137_v9 = vrot.slane %v136_v15, 1  ;;  %v148_v10 = vrot.slane %v147_v20, 1 }
  0x99   :  { %v159_v17 = vrot.slane %v158_v13, 1  ;;  %v170_v25 = vrot.slane %v169_v62, 1  ;;  %v181_v32 = vrot.slane %v180_v22, 1  ;;  %v192_v44 = vrot.slane %v191_v26, 1 }
  0x9a   :  { %v138_v53 = vadd.f32 %v137_v9, %v136_v15  ;;  %v149_v11 = vadd.f32 %v148_v10, %v147_v20  ;;  %v868_v20 = vld [vmem:[%s4307_s3 + $0x480] sm:$0xff] }
  0x9b   :  { %v160_v4 = vadd.f32 %v159_v17, %v158_v13  ;;  %v171_v60 = vadd.f32 %v170_v25, %v169_v62  ;;  %v182_v5 = vadd.f32 %v181_v32, %v180_v22  ;;  %v193_v6 = vadd.f32 %v192_v44, %v191_v26  ;;  %v2288_v13 = vld [vmem:[%s4309_s4 + $0x90] sm:$0xff]  ;;  %v2293_v62 = vld [vmem:[%s4309_s4 + $0xa8] sm:$0xff]  ;;  %v2302_v26 = vld [vmem:[%s4309_s4 + $0x98] sm:$0xff] }
  0x9c   :  { %v226_v31 = vadd.f32 %v199_v41, %v138_v53  ;;  %v227_v15 = vadd.f32 %v2097_v47, %v149_v11  ;;  %v2321_v44 = vld [vmem:[%s4309_s4 + $0xd8] sm:$0xff]  ;;  %v2326_v53 = vld [vmem:[%s4309_s4 + $0xc8] sm:$0xff]  ;;  %v2414_v25 = vld [vmem:[%s4309_s4 + $0x150] sm:$0xff]  ;;  %v2510_v8 = vpack.c.bf16 %v870_v40, %v868_v20 }
  0x9d   :  { %v228_v22 = vadd.f32 %v2100_v48, %v160_v4  ;;  %v229_v23 = vadd.f32 %v2103_v49, %v171_v60  ;;  %v230_v41 = vadd.f32 %v1682_v27, %v182_v5  ;;  %v231_v47 = vadd.f32 %v1685_v28, %v193_v6  ;;  %v2314_v27 = vld [vmem:[%s4309_s4 + $0xc0] sm:$0xff]  ;;  %v2358_v6 = vld [vmem:[%s4309_s4 + $0xf8] sm:$0xff]  ;;  %v2363_v60 = vld [vmem:[%s4309_s4 + $0x110] sm:$0xff]  ;;  %4440 = vst [vmem:[#allocation9_spill] sm:$0xff] %v2414_v25 }
  0x9e   :  { %v1524_v9 = vmul.f32 -1.442695, %v226_v31  ;;  %v1525_v10 = vmul.f32 -1.442695, %v227_v15  ;;  %v2334_v5 = vld [vmem:[%s4309_s4 + $0xe0] sm:$0xff]  ;;  %4434 = vst [vmem:[#allocation3_spill] sm:$0xff] %v2358_v6 }
  0x9f   :  { %v1526_v28 = vmul.f32 -1.442695, %v228_v22  ;;  %v1527_v17 = vmul.f32 -1.442695, %v229_v23  ;;  %v2342_v22 = vld [vmem:[%s4309_s4 + $0xf0] sm:$0xff]  ;;  %v2347_v23 = vld [vmem:[%s4309_s4 + $0x108] sm:$0xff] }
  0xa0   :  { %1565 = vpow2.f32 %v1524_v9  ;;  %4433 = vst [vmem:[#allocation2_spill] sm:$0xff] %v2347_v23  ;;  %v873_v9 = vld [vmem:[%s4307_s3 + $0x4a8] sm:$0xff]  ;;  %4435 = vst [vmem:[#allocation4_spill] sm:$0xff] %v2363_v60  ;;  %v872_v31 = vld [vmem:[%s4307_s3 + $0x4a0] sm:$0xff]  ;;  %v1528_v48 = vmul.f32 -1.442695, %v230_v41 }
  0xa1   :  { %1567 = vpow2.f32 %v1525_v10  ;;  %v874_v15 = vld [vmem:[%s4307_s3 + $0x4b0] sm:$0xff]  ;;  %v2389_v10 = vld [vmem:[%s4309_s4 + $0x138] sm:$0xff]  ;;  %v2398_v49 = vld [vmem:[%s4309_s4 + $0x128] sm:$0xff] }
  0xa2   :  { %1569 = vpow2.f32 %v1526_v28  ;;  %v875_v28 = vld [vmem:[%s4307_s3 + $0x4b8] sm:$0xff]  ;;  %4437 = vst [vmem:[#allocation6_spill] sm:$0xff] %v2389_v10  ;;  %4438 = vst [vmem:[#allocation7_spill] sm:$0xff] %v2398_v49  ;;  %v2403_v4 = vld [vmem:[%s4309_s4 + $0x140] sm:$0xff]  ;;  %v2407_v21 = vpack.c.bf16 %v874_v15, %v872_v31 }
  0xa3   :  { %1571 = vpow2.f32 %v1527_v17  ;;  %4439 = vst [vmem:[#allocation8_spill] sm:$0xff] %v2403_v4  ;;  %v2405_v59 = vpack.c.bf16 %v875_v28, %v873_v9  ;;  %v2419_v11 = vld [vmem:[%s4309_s4 + $0x168] sm:$0xff]  ;;  %v2427_v28 = vld [vmem:[%s4309_s4 + $0x158] sm:$0xff]  ;;  %v2432_v32 = vld [vmem:[%s4309_s4 + $0x170] sm:$0xff]  ;;  %v1529_v17 = vmul.f32 -1.442695, %v231_v47 }
  0xa4   :  { %4441 = vst [vmem:[#allocation10_spill] sm:$0xff] %v2419_v11  ;;  %4442 = vst [vmem:[#allocation11_spill] sm:$0xff] %v2427_v28  ;;  %v2440_v15 = vld [vmem:[%s4309_s4 + $0x180] sm:$0xff]  ;;  %v2445_v31 = vld [vmem:[%s4309_s4 + $0x198] sm:$0xff]  ;;  %1573 = vpow2.f32 %v1528_v48 }
  0xa5   :  { %4443 = vst [vmem:[#allocation12_spill] sm:$0xff] %v2432_v32  ;;  %4444 = vst [vmem:[#allocation13_spill] sm:$0xff] %v2440_v15  ;;  %v2450_v47 = vld [vmem:[%s4309_s4 + $0x188] sm:$0xff]  ;;  %v871_v9 = vld [vmem:[%s4307_s3 + $0x498] sm:$0xff]  ;;  %1575 = vpow2.f32 %v1529_v17  ;;  %v2512_v17 = vpack.c.bf16 %v867_v3, %v865_v19 }
  0xa6   :  { %4445 = vst [vmem:[#allocation14_spill] sm:$0xff] %v2445_v31  ;;  %4446 = vst [vmem:[#allocation15_spill] sm:$0xff] %v2450_v47  ;;  %v869_v41 = vld [vmem:[%s4307_s3 + $0x488] sm:$0xff]  ;;  %v2527_v3 = vld [vmem:[%s4309_s4 + $0x1f8] sm:$0xff] }
  0xa7   :  { %v2494_v48 = vld [vmem:[%s4309_s4 + $0x1c8] sm:$0xff]  ;;  %v2496_v2 = vpack.c.bf16 %v871_v9, %v869_v41  ;;  %4452 = vst [vmem:[#allocation21_spill] sm:$0xff] %v2512_v17  ;;  %4454 = vst [vmem:[#allocation23_spill] sm:$0xff] %v2527_v3  ;;  %v864_v20 = vld [vmem:[%s4307_s3 + $0x460] sm:$0xff] }
  0xa8   :  { %4449 = vst [vmem:[#allocation18_spill] sm:$0xff] %v2494_v48  ;;  %v2532_v19 = vld [vmem:[%s4309_s4 + $0x1e8] sm:$0xff]  ;;  %v866_v41 = vld [vmem:[%s4307_s3 + $0x470] sm:$0xff]  ;;  %v863_v9 = vld [vmem:[%s4307_s3 + $0x458] sm:$0xff] }
  0xa9   :  { %4455 = vst [vmem:[#allocation24_spill] sm:$0xff] %v2532_v19  ;;  %v2567_v31 = vld [vmem:[%s4309_s4 + $0x210] sm:$0xff]  ;;  %v2650_v28 = vld [vmem:[%s4309_s4 + $0x160] sm:$0xff]  ;;  %v2655_v3 = vld [vmem:[%s4309_s4 + $0x178] sm:$0xff] }
  0xaa   :  { %4457 = vst [vmem:[#allocation26_spill] sm:$0xff] %v2567_v31  ;;  %4470 = vst [vmem:[#allocation39_spill] sm:$0xff] %v2650_v28  ;;  %v2660_v48 = vld [vmem:[%s4309_s4 + $0x70] sm:$0xff]  ;;  %v2679_v15 = vld [vmem:[%s4309_s4 + $0x1a8] sm:$0xff] }
  0xab   :  { %4471 = vst [vmem:[#allocation40_spill] sm:$0xff] %v2655_v3  ;;  %v853_v19 = vld [vmem:[%s4307_s3 + $0x408] sm:$0xff]  ;;  %v855_v32 = vld [vmem:[%s4307_s3 + $0x418] sm:$0xff]  ;;  %v912_v49 = vld [vmem:[%s4307_s3 + $0x5e0] sm:$0xff] }
  0xac   :  { %v914_v10 = vld [vmem:[%s4307_s3 + $0x5f0] sm:$0xff]  ;;  %v909_v31 = vld [vmem:[%s4307_s3 + $0x5c8] sm:$0xff] }
  0xad   :  { %v1566_v16 = vpop.eup %1565  ;;  %v2761_v60 = vpack.c.bf16 %v914_v10, %v912_v49 }
  0xae   :  { %v1568_v37 = vpop.eup %1567  ;;  %v250_v7 = vadd.f32 1.0, %v1566_v16 }
  0xaf   :  { %v1570_v40 = vpop.eup %1569  ;;  %v251_v16 = vadd.f32 1.0, %v1568_v37  ;;  %4474 = vst [vmem:[#allocation43_spill] sm:$0xff] %v2761_v60 }
  0xb0   :  { %v1572_v37 = vpop.eup %1571  ;;  %v252_v56 = vadd.f32 1.0, %v1570_v40  ;;  %1577 = vrcp.f32 %v250_v7  ;;  %v862_v7 = vld [vmem:[%s4307_s3 + $0x450] sm:$0xff] }
  0xb1   :  { %v253_v47 = vadd.f32 1.0, %v1572_v37  ;;  %1579 = vrcp.f32 %v251_v16  ;;  %v2574_v16 = vpack.c.bf16 %v866_v41, %v864_v20  ;;  %v2586_v40 = vld [vmem:[%s4309_s4 + $0x230] sm:$0xff]  ;;  %v2599_v37 = vld [vmem:[%s4309_s4 + $0x28] sm:$0xff]  ;;  %v2611_v41 = vpack.c.bf16 %v863_v9, %v861_v50  ;;  %v2628_v50 = vld [vmem:[%s4309_s4 + $0x58] sm:$0xff] }
  0xb2   :  { %1581 = vrcp.f32 %v252_v56  ;;  %4461 = vst [vmem:[#allocation30_spill] sm:$0xff] %v2586_v40  ;;  %v2591_v56 = vld [vmem:[%s4309_s4 + $0x10] sm:$0xff]  ;;  %4463 = vst [vmem:[#allocation32_spill] sm:$0xff] %v2599_v37  ;;  %v2613_v20 = vpack.c.bf16 %v862_v7, %v860_v57  ;;  %v859_v57 = vld [vmem:[%s4307_s3 + $0x438] sm:$0xff] }
  0xb3   :  { %4459 = vst [vmem:[#allocation28_spill] sm:$0xff] %v2574_v16  ;;  %4462 = vst [vmem:[#allocation31_spill] sm:$0xff] %v2591_v56  ;;  %1583 = vrcp.f32 %v253_v47  ;;  %v2609_v47 = vld [vmem:[%s4309_s4 + $0x148] sm:$0xff]  ;;  %v856_v9 = vld [vmem:[%s4307_s3 + $0x420] sm:$0xff]  ;;  %v2703_v16 = vpack.c.bf16 %v859_v57, %v857_v0 }
  0xb4   :  { %4465 = vst [vmem:[#allocation34_spill] sm:$0xff] %v2609_v47  ;;  %4466 = vst [vmem:[#allocation35_spill] sm:$0xff] %v2611_v41  ;;  %v858_v7 = vld [vmem:[%s4307_s3 + $0x430] sm:$0xff]  ;;  %v852_v37 = vld [vmem:[%s4307_s3 + $0x400] sm:$0xff] }
  0xb5   :  { %4467 = vst [vmem:[#allocation36_spill] sm:$0xff] %v2613_v20  ;;  %4469 = vst [vmem:[#allocation38_spill] sm:$0xff] %v2628_v50  ;;  %v1574_v20 = vpop.eup %1573  ;;  %v854_v56 = vld [vmem:[%s4307_s3 + $0x410] sm:$0xff]  ;;  %v913_v40 = vld [vmem:[%s4307_s3 + $0x5e8] sm:$0xff]  ;;  %v2705_v4 = vpack.c.bf16 %v858_v7, %v856_v9 }
  0xb6   :  { %v1576_v41 = vpop.eup %1575  ;;  %4472 = vst [vmem:[#allocation41_spill] sm:$0xff] %v2703_v16  ;;  %v911_v0 = vld [vmem:[%s4307_s3 + $0x5d8] sm:$0xff]  ;;  %v908_v57 = vld [vmem:[%s4307_s3 + $0x5c0] sm:$0xff]  ;;  %v910_v9 = vld [vmem:[%s4307_s3 + $0x5d0] sm:$0xff]  ;;  %v254_v47 = vadd.f32 1.0, %v1574_v20  ;;  %v2757_v3 = vpack.c.bf16 %v854_v56, %v852_v37  ;;  %v2759_v28 = vpack.c.bf16 %v915_v24, %v913_v40  ;;  %v4481_v37 = vunpack.c.l.bf16 %v2058_v34 }
  0xb7   :  { %4473 = vst [vmem:[#allocation42_spill] sm:$0xff] %v2705_v4  ;;  %v907_v4 = vld [vmem:[%s4307_s3 + $0x5b8] sm:$0xff]  ;;  %v904_v16 = vld [vmem:[%s4307_s3 + $0x5a0] sm:$0xff]  ;;  %v255_v25 = vadd.f32 1.0, %v1576_v41  ;;  %v906_v20 = vld [vmem:[%s4307_s3 + $0x5b0] sm:$0xff]  ;;  %v2755_v41 = vpack.c.bf16 %v855_v32, %v853_v19  ;;  %v2766_v17 = vpack.c.bf16 %v911_v0, %v909_v31  ;;  %v2768_v36 = vpack.c.bf16 %v910_v9, %v908_v57 }
  0xb8   :  { %v901_v50 = vld [vmem:[%s4307_s3 + $0x588] sm:$0xff]  ;;  %v2770_v7 = vpack.c.bf16 %v907_v4, %v905_v46  ;;  %v900_v32 = vld [vmem:[%s4307_s3 + $0x580] sm:$0xff]  ;;  %v902_v24 = vld [vmem:[%s4307_s3 + $0x590] sm:$0xff]  ;;  %1585 = vrcp.f32 %v254_v47  ;;  %v4480_v4 = vunpack.c.l.bf16 %v2053_v33  ;;  %v4485_v57 = vunpack.c.l.bf16 %v2063_v35 }
  0xb9   :  { %4475 = vst [vmem:[#allocation44_spill] sm:$0xff] %v2766_v17  ;;  %4476 = vst [vmem:[#allocation45_spill] sm:$0xff] %v2768_v36  ;;  %v2783_v31 = vpack.c.bf16 %v903_v43, %v901_v50  ;;  %1587 = vrcp.f32 %v255_v25  ;;  %v4483_v25 = vunpack.c.h.bf16 %v2058_v34  ;;  %v2803_v50 = vpack.c.bf16 %v902_v24, %v900_v32  ;;  %v897_v34 = vld [vmem:[%s4307_s3 + $0x568] sm:$0xff]  ;;  %v899_v32 = vld [vmem:[%s4307_s3 + $0x578] sm:$0xff] }
  0xba   :  { %4477 = vst [vmem:[#allocation46_spill] sm:$0xff] %v2770_v7  ;;  %v896_v24 = vld [vmem:[%s4307_s3 + $0x560] sm:$0xff]  ;;  %v891_v36 = vld [vmem:[%s4307_s3 + $0x538] sm:$0xff] }
  0xbb   :  { %4479 = vst [vmem:[#allocation48_spill] sm:$0xff] %v2783_v31  ;;  %4484 = vst [vmem:[#allocation49_spill] sm:$0xff] %v2803_v50 }
  0xbd   :  { %v1578_v11 = vpop.eup %1577 }
  0xbe   :  { %v1580_v6 = vpop.eup %1579  ;;  %v2764_v23 = vrot.slane %v1578_v11, %v2045_v29  ;;  %v2781_v11 = vpack.c.bf16 %v906_v20, %v904_v16  ;;  %v4482_v16 = vunpack.c.h.bf16 %v2053_v33  ;;  %v4486_v20 = vunpack.c.l.bf16 %v2088_v42 }
  0xbf   :  { %v1582_v49 = vpop.eup %1581  ;;  %v2779_v10 = vrot.slane %v1580_v6, %v2045_v29 }
  0xc0   :  { %4478 = vst [vmem:[#allocation47_spill] sm:$0xff] %v2781_v11  ;;  %v1584_v19 = vpop.eup %1583  ;;  %v2786_v46 = vrot.slane %v1582_v49, %v2045_v29  ;;  %v508_v40 = vmul.f32 %v2764_v23, %v4480_v4  ;;  %v514_v56 = vmul.f32 %v2764_v23, %v4481_v37  ;;  %v4496_v11 = vunpack.c.l.bf16 %v2222_v18 }
  0xc1   :  { %v2795_v6 = vrot.slane %v1584_v19, %v2045_v29  ;;  %v509_v43 = vmul.f32 %v2779_v10, %v4482_v16  ;;  %v515_v47 = vmul.f32 %v2779_v10, %v4483_v25  ;;  %v4487_v19 = vunpack.c.h.bf16 %v2109_v51 }
  0xc2   :  { %v652_v0 = vpack.c.bf16 %v514_v56, %v508_v40  ;;  %v510_v9 = vmul.f32 %v2786_v46, %v4485_v57  ;;  %v516_v49 = vmul.f32 %v2786_v46, %v4486_v20  ;;  %v4488_v40 = vunpack.c.h.bf16 %v2063_v35  ;;  %v898_v20 = vld [vmem:[%s4307_s3 + $0x570] sm:$0xff]  ;;  %v895_v35 = vld [vmem:[%s4307_s3 + $0x558] sm:$0xff] }
  0xc3   :  { %v521_v33 = vmul.f32 %v2779_v10, %v4487_v19  ;;  %v653_v4 = vpack.c.bf16 %v515_v47, %v509_v43  ;;  %v4489_v56 = vunpack.c.h.bf16 %v2088_v42  ;;  %v4490_v25 = vunpack.c.l.bf16 %v2109_v51  ;;  %v893_v43 = vld [vmem:[%s4307_s3 + $0x548] sm:$0xff] }
  0xc4   :  { %v511_v37 = vmul.f32 %v2795_v6, %v4488_v40  ;;  %v654_v42 = vpack.c.bf16 %v516_v49, %v510_v9  ;;  %v4491_v47 = vunpack.c.h.bf16 %v2212_v63  ;;  %v4492_v19 = vunpack.c.h.bf16 %v2217_v45  ;;  %v894_v9 = vld [vmem:[%s4307_s3 + $0x550] sm:$0xff]  ;;  %v889_v49 = vld [vmem:[%s4307_s3 + $0x528] sm:$0xff] }
  0xc5   :  { %v517_v16 = vmul.f32 %v2795_v6, %v4489_v56  ;;  %v2832_v57 = vmul.f32 %v2764_v23, %v4490_v25  ;;  %v4493_v56 = vunpack.c.h.bf16 %v2222_v18  ;;  %1044 = vmatprep.mubr.bf16.mxu0 %v653_v4  ;;  %v2872_v7 = vmul.f32 %v2786_v46, %v4496_v11 }
  0xc6   :  { %v527_v51 = vmul.f32 %v2779_v10, %v4491_v47  ;;  %v523_v40 = vmul.f32 %v2795_v6, %v4492_v19  ;;  %v4494_v19 = vunpack.c.l.bf16 %v2212_v63  ;;  %v888_v63 = vld [vmem:[%s4307_s3 + $0x520] sm:$0xff]  ;;  %1045 = vmatmul.mubr.bf16.vlgmr.msra.gmra.mxu0 %v652_v0  ;;  %v4498_v11 = vunpack.c.h.bf16 %v2253_v14 }
  0xc7   :  { %v529_v25 = vmul.f32 %v2795_v6, %v4493_v56  ;;  %v655_v47 = vpack.c.bf16 %v517_v16, %v511_v37  ;;  %v4495_v56 = vunpack.c.l.bf16 %v2217_v45  ;;  %v890_v45 = vld [vmem:[%s4307_s3 + $0x530] sm:$0xff]  ;;  %v4497_v37 = vunpack.c.h.bf16 %v2239_v12  ;;  %1319 = vmatpush1.bf16.msra.mxu0 %v2241_v61 }
  0xc8   :  { %v526_v50 = vmul.f32 %v2764_v23, %v4494_v19  ;;  %v659_v4 = vpack.c.bf16 %v527_v51, %v521_v33  ;;  %v539_v16 = vmul.f32 %v2779_v10, %v4498_v11  ;;  %v2889_v19 = vpack.c.bf16 %v899_v32, %v897_v34  ;;  %1320 = vmatprep.subr.bf16.mxu0 %v2263_v39 }
  0xc9   :  { %v2867_v31 = vmul.f32 %v2786_v46, %v4495_v56  ;;  %v533_v18 = vmul.f32 %v2779_v10, %v4497_v37  ;;  %1197 = vmatprep.mubr.bf16.mxu1 %v655_v47  ;;  %v661_v56 = vpack.c.bf16 %v529_v25, %v523_v40  ;;  %v2892_v17 = vpack.c.bf16 %v898_v20, %v896_v24  ;;  %v1586_v47 = vpop.eup %1585 }
  0xca   :  { %v2894_v60 = vpack.c.bf16 %v895_v35, %v893_v43  ;;  %1198 = vmatmul.mubr.bf16.vlgmr.msra.gmra.mxu1 %v654_v42  ;;  %1054 = vmatprep.mubr.bf16.mxu0 %v659_v4  ;;  %v2897_v33 = vpack.c.bf16 %v894_v9, %v892_v1  ;;  %v2899_v51 = vpack.c.bf16 %v891_v36, %v889_v49  ;;  %v4504_v20 = vunpack.c.h.bf16 %v2269_v52 }
  0xcb   :  { %4499 = vst [vmem:[#allocation50_spill] sm:$0xff] %v2892_v17  ;;  %v2901_v37 = vpack.c.bf16 %v890_v45, %v888_v63  ;;  %1546 = vmatpush1.bf16.msra.mxu1 %v2241_v61  ;;  %1207 = vmatprep.mubr.bf16.mxu1 %v661_v56  ;;  %v658_v32 = vpack.c.bf16 %v526_v50, %v2832_v57  ;;  %v4505_v35 = vunpack.c.h.bf16 %v2277_v30  ;;  %v4506_v50 = vunpack.c.l.bf16 %v2239_v12  ;;  %v885_v56 = vld [vmem:[%s4307_s3 + $0x508] sm:$0xff] }
  0xcc   :  { %4500 = vst [vmem:[#allocation51_spill] sm:$0xff] %v2894_v60  ;;  %4501 = vst [vmem:[#allocation52_spill] sm:$0xff] %v2897_v33  ;;  %v660_v24 = vpack.c.bf16 %v2872_v7, %v2867_v31  ;;  %v535_v43 = vmul.f32 %v2795_v6, %v4504_v20  ;;  %1531 = vmatprep.subr.bf16.mxu1 %v2263_v39  ;;  %v665_v36 = vpack.c.bf16 %v539_v16, %v533_v18  ;;  %v887_v20 = vld [vmem:[%s4307_s3 + $0x518] sm:$0xff]  ;;  %v4567_v60 = vld [vmem:[#allocation36_spill] sm:$0xff] }
  0xcd   :  { %4502 = vst [vmem:[#allocation53_spill] sm:$0xff] %v2899_v51  ;;  %4503 = vst [vmem:[#allocation54_spill] sm:$0xff] %v2901_v37  ;;  %v541_v61 = vmul.f32 %v2795_v6, %v4505_v35  ;;  %v2920_v57 = vmul.f32 %v2764_v23, %v4506_v50  ;;  %1321 = vmatpush1.bf16.msra.mxu0 %v2271_v54  ;;  %v4507_v31 = vunpack.c.l.bf16 %v2253_v14  ;;  %v4508_v39 = vunpack.c.l.bf16 %v2269_v52  ;;  %v2947_v14 = vld [vmem:[%s4309_s4 + $0xa0] sm:$0xff]  ;;  %v2979_v35 = vld [vmem:[%s4309_s4 + $0xb8] sm:$0xff]  ;;  %v1588_v50 = vpop.eup %1587 }
  0xce   :  { %v4509_v25 = vunpack.c.l.bf16 %v2277_v30  ;;  %v4510_v9 = vunpack.c.h.bf16 %v2288_v13  ;;  %1322 = vmatprep.subr.bf16.mxu0 %v2405_v59  ;;  %v4511_v52 = vunpack.c.h.bf16 %v2293_v62  ;;  %v4512_v63 = vunpack.c.h.bf16 %v2302_v26  ;;  %1055 = vmatmul.mubr.bf16.gmra.mxu0 %v658_v32 }
  0xcf   :  { %v2927_v42 = vmul.f32 %v2764_v23, %v4507_v31  ;;  %v2932_v40 = vmul.f32 %v2786_v46, %v4508_v39  ;;  %v4513_v4 = vunpack.c.h.bf16 %v2307_v38  ;;  %v4514_v11 = vunpack.c.l.bf16 %v2288_v13  ;;  %1547 = vmatpush1.bf16.msra.mxu1 %v2271_v54  ;;  %v3005_v54 = vld [vmem:[%s4309_s4 + $0x1c0] sm:$0xff]  ;;  %1064 = vmatprep.mubr.bf16.mxu0 %v665_v36 }
  0xd0   :  { %v2937_v12 = vmul.f32 %v2786_v46, %v4509_v25  ;;  %v2942_v49 = vmul.f32 %v2779_v10, %v4510_v9  ;;  %v2953_v30 = vmul.f32 %v2779_v10, %v4511_v52  ;;  %v2958_v45 = vmul.f32 %v2795_v6, %v4512_v63  ;;  %1532 = vmatprep.subr.bf16.mxu1 %v2405_v59 }
  0xd1   :  { %v2963_v18 = vmul.f32 %v2795_v6, %v4513_v4  ;;  %v2968_v16 = vmul.f32 %v2764_v23, %v4514_v11  ;;  %v4515_v13 = vunpack.c.l.bf16 %v2293_v62  ;;  %v4516_v39 = vunpack.c.l.bf16 %v2302_v26  ;;  %1323 = vmatpush1.bf16.msra.mxu0 %v2407_v21 }
  0xd2   :  { %v4517_v9 = vunpack.c.l.bf16 %v2307_v38  ;;  %v4518_v63 = vunpack.c.h.bf16 %v2314_v27  ;;  %v4519_v62 = vunpack.c.h.bf16 %v2321_v44  ;;  %v4520_v38 = vunpack.c.h.bf16 %v2326_v53  ;;  %1208 = vmatmul.mubr.bf16.gmra.mxu1 %v660_v24  ;;  %1324 = vmatprep.subr.bf16.mxu0 %v2496_v2  ;;  %v4555_v24 = vld [vmem:[#allocation9_spill] sm:$0xff] }
  0xd3   :  { %v2985_v31 = vmul.f32 %v2764_v23, %v4515_v13  ;;  %v2990_v25 = vmul.f32 %v2786_v46, %v4516_v39  ;;  %v4521_v13 = vunpack.c.h.bf16 %v2334_v5  ;;  %v3025_v32 = vrot.slane %v1586_v47, %v2045_v29  ;;  %1548 = vmatpush1.bf16.msra.mxu1 %v2407_v21 }
  0xd4   :  { %v2995_v52 = vmul.f32 %v2786_v46, %v4517_v9  ;;  %v3000_v4 = vmul.f32 %v2779_v10, %v4518_v63  ;;  %v3011_v26 = vmul.f32 %v2779_v10, %v4519_v62  ;;  %v3016_v11 = vmul.f32 %v2795_v6, %v4520_v38  ;;  %1533 = vmatprep.subr.bf16.mxu1 %v2496_v2 }
  0xd5   :  { %v3021_v39 = vmul.f32 %v2795_v6, %v4521_v13  ;;  %v667_v59 = vpack.c.bf16 %v541_v61, %v535_v43  ;;  %v3028_v63 = vpack.c.bf16 %v887_v20, %v885_v56  ;;  %v3032_v38 = vrot.slane %v1588_v50, %v2045_v29  ;;  %1325 = vmatpush1.bf16.msra.mxu0 %v2510_v8  ;;  %v4528_v20 = vld [vmem:[#allocation21_spill] sm:$0xff] }
  0xd6   :  { %v664_v13 = vpack.c.bf16 %v2927_v42, %v2920_v57  ;;  %v666_v9 = vpack.c.bf16 %v2937_v12, %v2932_v40  ;;  %v671_v36 = vpack.c.bf16 %v2953_v30, %v2942_v49  ;;  %v673_v29 = vpack.c.bf16 %v2963_v18, %v2958_v45  ;;  %1326 = vmatprep.subr.bf16.mxu0 %v4528_v20 }
  0xd7   :  { %4522 = vst [vmem:[#allocation55_spill] sm:$0xff] %v3028_v63  ;;  %1217 = vmatprep.mubr.bf16.mxu1 %v667_v59  ;;  %v4523_v40 = vunpack.c.l.bf16 %v2314_v27  ;;  %v4524_v49 = vunpack.c.l.bf16 %v2321_v44  ;;  %v4525_v47 = vunpack.c.l.bf16 %v2326_v53  ;;  %v4526_v45 = vunpack.c.l.bf16 %v2334_v5  ;;  %v4529_v44 = vld [vmem:[#allocation2_spill] sm:$0xff]  ;;  %v4531_v53 = vld [vmem:[#allocation3_spill] sm:$0xff]  ;;  %v4533_v5 = vld [vmem:[#allocation4_spill] sm:$0xff]  ;;  %1549 = vmatpush1.bf16.msra.mxu1 %v2510_v8 }
  0xd8   :  { %v4527_v27 = vunpack.c.h.bf16 %v2342_v22  ;;  %v4530_v50 = vunpack.c.h.bf16 %v4529_v44  ;;  %v3126_v8 = vld [vmem:[%s4309_s4 + $0x1d8] sm:$0xff]  ;;  %1065 = vmatmul.mubr.bf16.gmra.mxu0 %v664_v13  ;;  %1534 = vmatprep.subr.bf16.mxu1 %v4528_v20  ;;  %v4547_v13 = vld [vmem:[#allocation28_spill] sm:$0xff]  ;;  %v4557_v63 = vld [vmem:[#allocation10_spill] sm:$0xff]  ;;  %v4563_v21 = vunpack.c.l.bf16 %v4555_v24 }
  0xd9   :  { %v3058_v12 = vmul.f32 %v2764_v23, %v4523_v40  ;;  %v3064_v2 = vmul.f32 %v2764_v23, %v4524_v49  ;;  %v3069_v30 = vmul.f32 %v2786_v46, %v4525_v47  ;;  %v3074_v18 = vmul.f32 %v2786_v46, %v4526_v45  ;;  %1074 = vmatprep.mubr.bf16.mxu0 %v671_v36  ;;  %v4552_v36 = vld [vmem:[#allocation35_spill] sm:$0xff] }
  0xda   :  { %v3079_v56 = vmul.f32 %v2779_v10, %v4527_v27  ;;  %v3085_v59 = vmul.f32 %v2779_v10, %v4530_v50  ;;  %v4532_v40 = vunpack.c.h.bf16 %v4531_v53  ;;  %v4534_v47 = vunpack.c.h.bf16 %v4533_v5  ;;  %1327 = vmatpush1.bf16.msra.mxu0 %v4547_v13  ;;  %1218 = vmatmul.mubr.bf16.gmra.mxu1 %v666_v9 }
  0xdb   :  { %v4535_v27 = vunpack.c.l.bf16 %v2342_v22  ;;  %v4536_v50 = vunpack.c.l.bf16 %v4529_v44  ;;  %v4539_v22 = vld [vmem:[#allocation5_spill] sm:$0xff]  ;;  %v4541_v44 = vld [vmem:[#allocation6_spill] sm:$0xff]  ;;  %1328 = vmatprep.subr.bf16.mxu0 %v4552_v36  ;;  %1227 = vmatprep.mubr.bf16.mxu1 %v673_v29  ;;  %v4565_v9 = vunpack.c.l.bf16 %v4557_v63 }
  0xdc   :  { %v3090_v49 = vmul.f32 %v2795_v6, %v4532_v40  ;;  %v3095_v45 = vmul.f32 %v2795_v6, %v4534_v47  ;;  %v4537_v40 = vunpack.c.l.bf16 %v4531_v53  ;;  %v4538_v47 = vunpack.c.l.bf16 %v4533_v5  ;;  %1550 = vmatpush1.bf16.msra.mxu1 %v4547_v13  ;;  %v4573_v29 = vld [vmem:[#allocation13_spill] sm:$0xff] }
  0xdd   :  { %v3100_v61 = vmul.f32 %v2764_v23, %v4535_v27  ;;  %v3106_v43 = vmul.f32 %v2764_v23, %v4536_v50  ;;  %v4540_v27 = vunpack.c.h.bf16 %v4539_v22  ;;  %v4542_v53 = vunpack.c.h.bf16 %v4541_v44  ;;  %v4543_v50 = vld [vmem:[#allocation7_spill] sm:$0xff]  ;;  %1535 = vmatprep.subr.bf16.mxu1 %v4552_v36 }
  0xde   :  { %v3111_v62 = vmul.f32 %v2786_v46, %v4537_v40  ;;  %v3116_v7 = vmul.f32 %v2786_v46, %v4538_v47  ;;  %v4544_v40 = vunpack.c.h.bf16 %v4543_v50  ;;  %v4548_v20 = vunpack.c.l.bf16 %v4539_v22  ;;  %1329 = vmatpush1.bf16.msra.mxu0 %v4567_v60 }
  0xdf   :  { %v3121_v1 = vmul.f32 %v2779_v10, %v4540_v27  ;;  %v3132_v5 = vmul.f32 %v2779_v10, %v4542_v53  ;;  %v4545_v27 = vld [vmem:[#allocation8_spill] sm:$0xff]  ;;  %v4549_v57 = vunpack.c.l.bf16 %v4541_v44  ;;  %v4550_v42 = vunpack.c.l.bf16 %v4543_v50 }
  0xe0   :  { %v3137_v47 = vmul.f32 %v2795_v6, %v4544_v40  ;;  %v4546_v34 = vunpack.c.h.bf16 %v4545_v27  ;;  %v3149_v53 = vmul.f32 %v2764_v23, %v4548_v20  ;;  %v4553_v22 = vunpack.c.l.bf16 %v4545_v27  ;;  %v4559_v27 = vld [vmem:[#allocation11_spill] sm:$0xff]  ;;  %1551 = vmatpush1.bf16.msra.mxu1 %v4567_v60  ;;  %v3257_v60 = vld [vmem:[%s4309_s4 + $0x1f0] sm:$0xff] }
  0xe1   :  { %v3154_v40 = vmul.f32 %v2764_v23, %v4549_v57  ;;  %v4556_v44 = vunpack.c.h.bf16 %v4555_v24  ;;  %v4558_v50 = vunpack.c.h.bf16 %v4557_v63  ;;  %v3220_v63 = vld [vmem:[%s4309_s4 + $0xd0] sm:$0xff]  ;;  %v3234_v24 = vld [vmem:[%s4309_s4 + $0xe8] sm:$0xff] }
  0xe2   :  { %v3142_v0 = vmul.f32 %v2795_v6, %v4546_v34  ;;  %v3159_v34 = vmul.f32 %v2786_v46, %v4550_v42  ;;  %v3166_v20 = vmul.f32 %v2786_v46, %v4553_v22  ;;  %v4560_v22 = vunpack.c.h.bf16 %v4559_v27 }
  0xe3   :  { %v3171_v57 = vmul.f32 %v2779_v10, %v4556_v44  ;;  %v3176_v42 = vmul.f32 %v2779_v10, %v4558_v50  ;;  %v4561_v44 = vld [vmem:[#allocation12_spill] sm:$0xff] }
  0xe4   :  { %4551 = vst [vmem:[#allocation21_spill] sm:$0xff] %v3159_v34  ;;  %4554 = vst [vmem:[#allocation2_spill] sm:$0xff] %v3166_v20  ;;  %v3185_v37 = vmul.f32 %v2795_v6, %v4560_v22  ;;  %v4562_v51 = vunpack.c.h.bf16 %v4561_v44  ;;  %v3201_v22 = vmul.f32 %v2764_v23, %v4563_v21  ;;  %v4568_v21 = vld [vmem:[#allocation41_spill] sm:$0xff]  ;;  %v4571_v50 = vunpack.c.l.bf16 %v4561_v44 }
  0xe5   :  { %1330 = vmatprep.subr.bf16.mxu0 %v4568_v21  ;;  %v4574_v20 = vunpack.c.h.bf16 %v4573_v29  ;;  %1536 = vmatprep.subr.bf16.mxu1 %v4568_v21  ;;  %v4583_v21 = vld [vmem:[#allocation42_spill] sm:$0xff] }
  0xe6   :  { %v3190_v33 = vmul.f32 %v2795_v6, %v4562_v51  ;;  %4564 = vst [vmem:[#allocation3_spill] sm:$0xff] %v3201_v22  ;;  %v3206_v51 = vmul.f32 %v2764_v23, %v4565_v9  ;;  %v4569_v9 = vunpack.c.l.bf16 %v4559_v27  ;;  %v3247_v34 = vmul.f32 %v2786_v46, %v4571_v50  ;;  %v4577_v50 = vld [vmem:[#allocation14_spill] sm:$0xff]  ;;  %1331 = vmatpush1.bf16.msra.mxu0 %v4583_v21  ;;  %v4589_v22 = vld [vmem:[#allocation19_spill] sm:$0xff] }
  0xe7   :  { %v3252_v17 = vmul.f32 %v2779_v10, %v4574_v20  ;;  %v4576_v27 = vpack.c.bf16 %v2985_v31, %v2968_v16  ;;  %v4580_v20 = vld [vmem:[#allocation17_spill] sm:$0xff]  ;;  %v3279_v16 = vld [vmem:[%s4309_s4 + $0x208] sm:$0xff]  ;;  %v4582_v31 = vpack.c.bf16 %v3011_v26, %v3000_v4  ;;  %v4592_v26 = vpack.c.bf16 %v2995_v52, %v2990_v25  ;;  %1332 = vmatprep.subr.bf16.mxu0 %v2755_v41 }
  0xe8   :  { %4566 = vst [vmem:[#allocation4_spill] sm:$0xff] %v3206_v51  ;;  %v3242_v36 = vmul.f32 %v2786_v46, %v4569_v9  ;;  %4572 = vst [vmem:[#allocation6_spill] sm:$0xff] %v3247_v34  ;;  %v4578_v9 = vunpack.c.h.bf16 %v4577_v50  ;;  %v4581_v29 = vunpack.c.h.bf16 %v4580_v20  ;;  %v4590_v51 = vunpack.c.h.bf16 %v4589_v22  ;;  %1552 = vmatpush1.bf16.msra.mxu1 %v4583_v21  ;;  %v4615_v25 = vld [vmem:[#allocation25_spill] sm:$0xff] }
  0xe9   :  { %4575 = vst [vmem:[#allocation7_spill] sm:$0xff] %v3252_v17  ;;  %1075 = vmatmul.mubr.bf16.gmra.mxu0 %v4576_v27  ;;  %v4584_v27 = vld [vmem:[#allocation15_spill] sm:$0xff]  ;;  %1228 = vmatmul.mubr.bf16.gmra.mxu1 %v4592_v26  ;;  %v4600_v52 = vpack.c.bf16 %v3021_v39, %v3016_v11  ;;  %v4612_v11 = vld [vmem:[#allocation24_spill] sm:$0xff] }
  0xea   :  { %4570 = vst [vmem:[#allocation5_spill] sm:$0xff] %v3242_v36  ;;  %v3268_v13 = vmul.f32 %v2779_v10, %v4578_v9  ;;  %v3273_v34 = vmul.f32 %v2779_v10, %v4581_v29  ;;  %1084 = vmatprep.mubr.bf16.mxu0 %v4582_v31  ;;  %v4585_v9 = vunpack.c.h.bf16 %v4584_v27  ;;  %v4587_v29 = vld [vmem:[#allocation18_spill] sm:$0xff]  ;;  %v4593_v31 = vld [vmem:[#allocation16_spill] sm:$0xff]  ;;  %1537 = vmatprep.subr.bf16.mxu1 %v2755_v41  ;;  %v4621_v41 = vunpack.c.l.bf16 %v4615_v25 }
  0xeb   :  { %v4588_v50 = vunpack.c.h.bf16 %v4587_v29  ;;  %v4594_v27 = vunpack.c.h.bf16 %v4593_v31  ;;  %1237 = vmatprep.mubr.bf16.mxu1 %v4600_v52  ;;  %1333 = vmatpush1.bf16.msra.mxu0 %v2757_v3 }
  0xec   :  { %4579 = vst [vmem:[#allocation8_spill] sm:$0xff] %v3268_v13  ;;  %v3288_v44 = vmul.f32 %v2795_v6, %v4585_v9  ;;  %v3298_v13 = vmul.f32 %v2795_v6, %v4590_v51  ;;  %v4598_v51 = vunpack.c.l.bf16 %v4580_v20  ;;  %v4603_v20 = vunpack.c.l.bf16 %v4589_v22  ;;  %v4610_v22 = vld [vmem:[#allocation23_spill] sm:$0xff]  ;;  %1334 = vmatprep.subr.bf16.mxu0 %v2759_v28  ;;  %1553 = vmatpush1.bf16.msra.mxu1 %v2757_v3 }
  0xed   :  { %v3293_v36 = vmul.f32 %v2779_v10, %v4588_v50  ;;  %v3308_v9 = vmul.f32 %v2795_v6, %v4594_v27  ;;  %v4595_v50 = vld [vmem:[#allocation20_spill] sm:$0xff]  ;;  %v4601_v27 = vunpack.c.l.bf16 %v4587_v29  ;;  %v4607_v29 = vld [vmem:[#allocation22_spill] sm:$0xff]  ;;  %v4626_v3 = vpack.c.bf16 %v3064_v2, %v3058_v12  ;;  %1538 = vmatprep.subr.bf16.mxu1 %v2759_v28  ;;  %v4632_v28 = vld [vmem:[#allocation43_spill] sm:$0xff] }
  0xee   :  { %4586 = vst [vmem:[#allocation28_spill] sm:$0xff] %v3288_v44  ;;  %4591 = vst [vmem:[#allocation35_spill] sm:$0xff] %v3298_v13  ;;  %v4596_v44 = vunpack.c.h.bf16 %v4595_v50  ;;  %v3318_v4 = vmul.f32 %v2764_v23, %v4598_v51  ;;  %v3335_v51 = vmul.f32 %v2786_v46, %v4603_v20  ;;  %v4605_v39 = vunpack.c.l.bf16 %v4595_v50 }
  0xef   :  { %v4608_v52 = vunpack.c.h.bf16 %v4607_v29  ;;  %v4611_v20 = vunpack.c.h.bf16 %v4610_v22  ;;  %v4613_v50 = vunpack.c.h.bf16 %v4612_v11  ;;  %v4616_v13 = vunpack.c.h.bf16 %v4615_v25  ;;  %1335 = vmatpush2.bf16.msra.mxu0 %v4632_v28 }
  0xf0   :  { %v3313_v17 = vmul.f32 %v2795_v6, %v4596_v44  ;;  %4599 = vst [vmem:[#allocation10_spill] sm:$0xff] %v3318_v4  ;;  %v3330_v44 = vmul.f32 %v2764_v23, %v4601_v27  ;;  %4604 = vst [vmem:[#allocation12_spill] sm:$0xff] %v3335_v51  ;;  %v3344_v21 = vmul.f32 %v2786_v46, %v4605_v39  ;;  %v4622_v4 = vld [vmem:[#allocation26_spill] sm:$0xff]  ;;  %1554 = vmatpush2.bf16.msra.mxu1 %v4632_v28 }
  0xf1   :  { %v3349_v27 = vmul.f32 %v2779_v10, %v4608_v52  ;;  %v3354_v26 = vmul.f32 %v2779_v10, %v4611_v20  ;;  %v3362_v39 = vmul.f32 %v2795_v6, %v4613_v50  ;;  %v3367_v52 = vmul.f32 %v2795_v6, %v4616_v13  ;;  %1085 = vmatmul.mubr.bf16.gmra.mxu0 %v4626_v3 }
  0xf2   :  { %4597 = vst [vmem:[#allocation9_spill] sm:$0xff] %v3313_v17  ;;  %4602 = vst [vmem:[#allocation11_spill] sm:$0xff] %v3330_v44  ;;  %v4618_v17 = vunpack.c.l.bf16 %v4607_v29  ;;  %v4619_v50 = vunpack.c.l.bf16 %v4610_v22  ;;  %v4620_v13 = vunpack.c.l.bf16 %v4612_v11  ;;  %v3395_v51 = vmul.f32 %v2786_v46, %v4621_v41  ;;  %v4627_v41 = vld [vmem:[#allocation29_spill] sm:$0xff] }
  0xf3   :  { %4606 = vst [vmem:[#allocation36_spill] sm:$0xff] %v3344_v21  ;;  %4609 = vst [vmem:[#allocation41_spill] sm:$0xff] %v3349_v27  ;;  %v4623_v22 = vunpack.c.h.bf16 %v4622_v4  ;;  %v4624_v21 = vld [vmem:[#allocation27_spill] sm:$0xff]  ;;  %v4631_v12 = vpack.c.bf16 %v3085_v59, %v3079_v56  ;;  %v4636_v56 = vld [vmem:[#allocation44_spill] sm:$0xff] }
  0xf4   :  { %4614 = vst [vmem:[#allocation17_spill] sm:$0xff] %v3362_v39  ;;  %4617 = vst [vmem:[#allocation42_spill] sm:$0xff] %v3367_v52  ;;  %v3372_v20 = vmul.f32 %v2764_v23, %v4618_v17  ;;  %v3382_v44 = vmul.f32 %v2764_v23, %v4619_v50  ;;  %v3387_v29 = vmul.f32 %v2786_v46, %v4620_v13  ;;  %v4625_v11 = vunpack.c.h.bf16 %v4624_v21 }
  0xf5   :  { %v3400_v50 = vmul.f32 %v2779_v10, %v4623_v22  ;;  %v4628_v17 = vunpack.c.h.bf16 %v4627_v41  ;;  %v4629_v22 = vld [vmem:[#allocation30_spill] sm:$0xff]  ;;  %1094 = vmatprep.mubr.bf16.mxu0 %v4631_v12  ;;  %1336 = vmatprep.subr.bf16.mxu0 %v4636_v56  ;;  %v4637_v12 = vunpack.c.l.bf16 %v4624_v21 }
  0xf6   :  { %v3405_v13 = vmul.f32 %v2779_v10, %v4625_v11  ;;  %v4630_v52 = vunpack.c.h.bf16 %v4629_v22  ;;  %v4633_v11 = vunpack.c.l.bf16 %v4622_v4  ;;  %v4639_v4 = vunpack.c.l.bf16 %v4627_v41  ;;  %1539 = vmatprep.subr.bf16.mxu1 %v4636_v56  ;;  %v3514_v10 = vld [vmem:[%s4309_s4 + $0x100] sm:$0xff] }
  0xf7   :  { %v3416_v39 = vmul.f32 %v2795_v6, %v4628_v17  ;;  %v3447_v2 = vmul.f32 %v2764_v23, %v4637_v12  ;;  %v4660_v17 = vld [vmem:[#allocation34_spill] sm:$0xff] }
  0xf8   :  { %v3421_v27 = vmul.f32 %v2795_v6, %v4630_v52  ;;  %v3435_v3 = vmul.f32 %v2764_v23, %v4633_v11  ;;  %v4635_v52 = vpack.c.bf16 %v3074_v18, %v3069_v30  ;;  %v3452_v11 = vmul.f32 %v2786_v46, %v4639_v4  ;;  %v4664_v56 = vld [vmem:[#allocation46_spill] sm:$0xff] }
  0xf9   :  { %4638 = vst [vmem:[#allocation18_spill] sm:$0xff] %v3447_v2  ;;  %v4641_v30 = vpack.c.bf16 %v3095_v45, %v3090_v49  ;;  %v4642_v18 = vunpack.c.l.bf16 %v4629_v22  ;;  %v4649_v22 = vld [vmem:[#allocation32_spill] sm:$0xff]  ;;  %v4657_v49 = vld [vmem:[#allocation45_spill] sm:$0xff]  ;;  %v4663_v6 = vunpack.c.h.bf16 %v4660_v17 }
  0xfa   :  { %4634 = vst [vmem:[#allocation15_spill] sm:$0xff] %v3435_v3  ;;  %1238 = vmatmul.mubr.bf16.gmra.mxu1 %v4635_v52  ;;  %4640 = vst [vmem:[#allocation19_spill] sm:$0xff] %v3452_v11  ;;  %v4644_v52 = vld [vmem:[#allocation31_spill] sm:$0xff]  ;;  %v4650_v28 = vunpack.c.l.bf16 %v4649_v22  ;;  %1337 = vmatpush2.bf16.msra.mxu0 %v4657_v49  ;;  %v3534_v2 = vld [vmem:[%s4309_s4 + $0x118] sm:$0xff] }
  0xfb   :  { %1247 = vmatprep.mubr.bf16.mxu1 %v4641_v30  ;;  %v3462_v21 = vmul.f32 %v2786_v46, %v4642_v18  ;;  %v4645_v12 = vunpack.c.l.bf16 %v4644_v52  ;;  %v4647_v4 = vunpack.c.h.bf16 %v4644_v52  ;;  %v4652_v18 = vunpack.c.h.bf16 %v4649_v22  ;;  %v4654_v52 = vld [vmem:[#allocation33_spill] sm:$0xff]  ;;  %1338 = vmatprep.subr.bf16.mxu0 %v4664_v56 }
  0xfc   :  { %v3481_v30 = vmul.f32 %v3025_v32, %v4650_v28  ;;  %v4658_v45 = vunpack.c.h.bf16 %v4654_v52  ;;  %v4661_v22 = vunpack.c.l.bf16 %v4660_v17  ;;  %1555 = vmatpush2.bf16.msra.mxu1 %v4657_v49  ;;  %v3554_v49 = vld [vmem:[%s4309_s4 + $0x220] sm:$0xff] }
  0xfd   :  { %4643 = vst [vmem:[#allocation16_spill] sm:$0xff] %v3462_v21  ;;  %v3467_v41 = vmul.f32 %v3025_v32, %v4645_v12  ;;  %v3472_v59 = vmul.f32 %v3032_v38, %v4647_v4  ;;  %v3486_v12 = vmul.f32 %v3032_v38, %v4652_v18  ;;  %v4655_v4 = vunpack.c.l.bf16 %v4654_v52  ;;  %1540 = vmatprep.subr.bf16.mxu1 %v4664_v56  ;;  %v4677_v56 = vld [vmem:[#allocation47_spill] sm:$0xff] }
  0xfe   :  { %4651 = vst [vmem:[#allocation23_spill] sm:$0xff] %v3481_v30  ;;  %v3499_v28 = vmul.f32 %v3032_v38, %v4658_v45  ;;  %v3504_v18 = vmul.f32 %v3025_v32, %v4661_v22  ;;  %v4665_v22 = vld [vmem:[#allocation37_spill] sm:$0xff]  ;;  %v4673_v52 = vpack.c.bf16 %v3106_v43, %v3100_v61  ;;  %v4676_v61 = vpack.c.bf16 %v3132_v5, %v3121_v1  ;;  %v4682_v5 = vld [vmem:[#allocation48_spill] sm:$0xff] }
  0xff   :  { %4646 = vst [vmem:[#allocation20_spill] sm:$0xff] %v3467_v41  ;;  %4648 = vst [vmem:[#allocation22_spill] sm:$0xff] %v3472_v59  ;;  %v3491_v25 = vmul.f32 %v3025_v32, %v4655_v4  ;;  %v3509_v4 = vmul.f32 %v3032_v38, %v4663_v6  ;;  %v4666_v11 = vunpack.c.h.bf16 %v4665_v22  ;;  %v4667_v6 = vld [vmem:[#allocation38_spill] sm:$0xff]  ;;  %v4674_v45 = vunpack.c.l.bf16 %v4665_v22  ;;  %v3576_v43 = vld [vmem:[%s4309_s4 + $0x238] sm:$0xff]  ;;  %1339 = vmatpush2.bf16.msra.mxu0 %v4677_v56 }
 0x100   :  { %4653 = vst [vmem:[#allocation24_spill] sm:$0xff] %v3486_v12  ;;  %4659 = vst [vmem:[#allocation26_spill] sm:$0xff] %v3499_v28  ;;  %v4668_v21 = vunpack.c.h.bf16 %v4667_v6  ;;  %1095 = vmatmul.mubr.bf16.gmra.mxu0 %v4673_v52  ;;  %v4681_v1 = vpack.c.bf16 %v3116_v7, %v3111_v62  ;;  %1340 = vmatprep.subr.bf16.mxu0 %v4682_v5  ;;  %v4685_v7 = vpack.c.bf16 %v3142_v0, %v3137_v47 }
 0x101   :  { %4656 = vst [vmem:[#allocation25_spill] sm:$0xff] %v3491_v25  ;;  %4662 = vst [vmem:[#allocation27_spill] sm:$0xff] %v3504_v18  ;;  %v3524_v17 = vmul.f32 %v3032_v38, %v4666_v11  ;;  %v4669_v11 = vld [vmem:[#allocation39_spill] sm:$0xff]  ;;  %v3565_v25 = vmul.f32 %v3025_v32, %v4674_v45  ;;  %1104 = vmatprep.mubr.bf16.mxu0 %v4676_v61  ;;  %v477_v45 = vunpack.c.h.bf16 %v3554_v49  ;;  %1556 = vmatpush2.bf16.msra.mxu1 %v4677_v56 }
 0x102   :  { %v3529_v3 = vmul.f32 %v3032_v38, %v4668_v21  ;;  %v4670_v41 = vunpack.c.h.bf16 %v4669_v11  ;;  %v4671_v21 = vld [vmem:[#allocation40_spill] sm:$0xff]  ;;  %v4678_v52 = vunpack.c.l.bf16 %v4669_v11  ;;  %1248 = vmatmul.mubr.bf16.gmra.mxu1 %v4681_v1  ;;  %v4683_v11 = vunpack.c.h.bf16 %v2660_v48  ;;  %1541 = vmatprep.subr.bf16.mxu1 %v4682_v5 }
 0x103   :  { %v4672_v59 = vunpack.c.h.bf16 %v4671_v21  ;;  %1257 = vmatprep.mubr.bf16.mxu1 %v4685_v7  ;;  %v4686_v1 = vunpack.c.h.bf16 %v2674_v55  ;;  %v4688_v61 = vunpack.c.h.bf16 %v2679_v15  ;;  %v483_v28 = vunpack.c.h.bf16 %v3576_v43 }
 0x104   :  { %v3544_v30 = vmul.f32 %v3032_v38, %v4670_v41  ;;  %v3587_v22 = vmul.f32 %v3025_v32, %v4678_v52  ;;  %v411_v41 = vunpack.c.h.bf16 %v3534_v2  ;;  %v3604_v52 = vmul.f32 %v3032_v38, %v4683_v11 }
 0x105   :  { %v3549_v12 = vmul.f32 %v3032_v38, %v4672_v59  ;;  %v4675_v59 = vunpack.c.l.bf16 %v4667_v6  ;;  %v4680_v6 = vunpack.c.l.bf16 %v4671_v21  ;;  %v4684_v21 = vunpack.c.h.bf16 %v2669_v58 }
 0x106   :  { %4679 = vst [vmem:[#allocation29_spill] sm:$0xff] %v3587_v22  ;;  %v3621_v11 = vmul.f32 %v3032_v38, %v4686_v1  ;;  %v4689_v47 = vunpack.c.l.bf16 %v2660_v48  ;;  %v4691_v7 = vunpack.c.l.bf16 %v2669_v58  ;;  %v4694_v22 = vld [vmem:[#allocation49_spill] sm:$0xff]  ;;  %v4695_v48 = vunpack.c.l.bf16 %v2679_v15 }
 0x107   :  { %v3570_v18 = vmul.f32 %v3025_v32, %v4675_v59  ;;  %v3592_v59 = vmul.f32 %v3025_v32, %v4680_v6  ;;  %v3609_v6 = vmul.f32 %v3032_v38, %v4684_v21  ;;  %v3626_v21 = vmul.f32 %v3032_v38, %v4688_v61  ;;  %1341 = vmatpush2.bf16.msra.mxu0 %v4694_v22 }
 0x108   :  { %4687 = vst [vmem:[#allocation30_spill] sm:$0xff] %v3621_v11  ;;  %v3635_v56 = vmul.f32 %v3025_v32, %v4689_v47  ;;  %v3640_v1 = vmul.f32 %v3025_v32, %v4691_v7  ;;  %v4693_v61 = vunpack.c.l.bf16 %v2674_v55  ;;  %v3653_v47 = vmul.f32 %v3025_v32, %v4695_v48  ;;  %1342 = vmatprep.subr.bf16.mxu0 %v2889_v19 }
 0x109   :  { %v4696_v58 = vunpack.c.h.bf16 %v2947_v14  ;;  %v4697_v55 = vunpack.c.h.bf16 %v2979_v35  ;;  %v4698_v15 = vunpack.c.h.bf16 %v3005_v54  ;;  %v4699_v0 = vunpack.c.h.bf16 %v3126_v8  ;;  %1557 = vmatpush2.bf16.msra.mxu1 %v4694_v22 }
 0x10a   :  { %4690 = vst [vmem:[#allocation43_spill] sm:$0xff] %v3635_v56  ;;  %4692 = vst [vmem:[#allocation44_spill] sm:$0xff] %v3640_v1  ;;  %v3645_v62 = vmul.f32 %v3025_v32, %v4693_v61  ;;  %v4700_v11 = vunpack.c.l.bf16 %v2947_v14  ;;  %1542 = vmatprep.subr.bf16.mxu1 %v2889_v19  ;;  %v4706_v5 = vunpack.c.l.bf16 %v3126_v8  ;;  %v4709_v19 = vld [vmem:[#allocation50_spill] sm:$0xff]  ;;  %v4710_v8 = vunpack.c.h.bf16 %v3234_v24 }
 0x10b   :  { %v3658_v7 = vmul.f32 %v3032_v38, %v4696_v58  ;;  %v3663_v61 = vmul.f32 %v3032_v38, %v4697_v55  ;;  %v3671_v48 = vmul.f32 %v3032_v38, %v4698_v15  ;;  %v3676_v58 = vmul.f32 %v3032_v38, %v4699_v0  ;;  %1343 = vmatpush2.bf16.msra.mxu0 %v4709_v19  ;;  %v4712_v56 = vld [vmem:[#allocation2_spill] sm:$0xff] }
 0x10c   :  { %v3681_v55 = vmul.f32 %v3025_v32, %v4700_v11  ;;  %v4702_v15 = vunpack.c.l.bf16 %v2979_v35  ;;  %v4704_v0 = vunpack.c.l.bf16 %v3005_v54  ;;  %v4705_v11 = vpack.c.bf16 %v3154_v40, %v3149_v53 }
 0x10d   :  { %v3707_v35 = vmul.f32 %v3025_v32, %v4706_v5  ;;  %v4708_v53 = vpack.c.bf16 %v3176_v42, %v3171_v57  ;;  %v3724_v5 = vmul.f32 %v3032_v38, %v4710_v8  ;;  %v410_v22 = vunpack.c.l.bf16 %v3534_v2  ;;  %v4713_v57 = vld [vmem:[#allocation21_spill] sm:$0xff]  ;;  %1558 = vmatpush2.bf16.msra.mxu1 %v4709_v19 }
 0x10e   :  { %4701 = vst [vmem:[#allocation31_spill] sm:$0xff] %v3681_v55  ;;  %v3691_v1 = vmul.f32 %v3025_v32, %v4702_v15  ;;  %v3696_v14 = vmul.f32 %v3025_v32, %v4704_v0  ;;  %1105 = vmatmul.mubr.bf16.gmra.mxu0 %v4705_v11  ;;  %v4707_v15 = vunpack.c.h.bf16 %v3220_v63  ;;  %v404_v0 = vunpack.c.l.bf16 %v3514_v10 }
 0x10f   :  { %1114 = vmatprep.mubr.bf16.mxu0 %v4708_v53  ;;  %v4711_v11 = vunpack.c.h.bf16 %v3257_v60  ;;  %v4714_v42 = vpack.c.bf16 %v4712_v56, %v4713_v57  ;;  %v4715_v53 = vld [vmem:[#allocation51_spill] sm:$0xff]  ;;  %v4716_v55 = vunpack.c.h.bf16 %v3279_v16  ;;  %v476_v2 = vunpack.c.l.bf16 %v3554_v49 }
 0x110   :  { %4703 = vst [vmem:[#allocation32_spill] sm:$0xff] %v3691_v1  ;;  %v3712_v54 = vmul.f32 %v3032_v38, %v4707_v15  ;;  %1344 = vmatprep.subr.bf16.mxu0 %v4715_v53  ;;  %v4717_v1 = vunpack.c.l.bf16 %v3220_v63  ;;  %v4718_v56 = vpack.c.bf16 %v3190_v33, %v3185_v37  ;;  %v4720_v63 = vunpack.c.l.bf16 %v3257_v60  ;;  %1543 = vmatprep.subr.bf16.mxu1 %v4715_v53 }
 0x111   :  { %v3729_v15 = vmul.f32 %v3032_v38, %v4711_v11  ;;  %1258 = vmatmul.mubr.bf16.gmra.mxu1 %v4714_v42  ;;  %v3741_v8 = vmul.f32 %v3032_v38, %v4716_v55  ;;  %v4719_v42 = vunpack.c.l.bf16 %v3234_v24  ;;  %v482_v49 = vunpack.c.l.bf16 %v3576_v43  ;;  %v4729_v43 = vld [vmem:[#allocation8_spill] sm:$0xff] }
 0x112   :  { %v3746_v11 = vmul.f32 %v3025_v32, %v4717_v1  ;;  %1267 = vmatprep.mubr.bf16.mxu1 %v4718_v56  ;;  %v3763_v1 = vmul.f32 %v3025_v32, %v4720_v63  ;;  %v4722_v37 = vunpack.c.l.bf16 %v3279_v16  ;;  %v4724_v24 = vunpack.c.h.bf16 %v3514_v10  ;;  %v4727_v10 = vld [vmem:[#allocation53_spill] sm:$0xff] }
 0x113   :  { %v3758_v55 = vmul.f32 %v3025_v32, %v4719_v42  ;;  %v3780_v60 = vmul.f32 %v3032_v38, %v411_v41  ;;  %v4726_v42 = vld [vmem:[#allocation52_spill] sm:$0xff]  ;;  %v3786_v53 = vmul.f32 %v3032_v38, %v477_v45  ;;  %v3789_v16 = vmul.f32 %v3032_v38, %v483_v28  ;;  %v884_v41 = vld [vmem:[%s4307_s3 + $0x500] sm:$0xff] }
 0x114   :  { %4721 = vst [vmem:[#allocation33_spill] sm:$0xff] %v3763_v1  ;;  %v3772_v19 = vmul.f32 %v3025_v32, %v4722_v37  ;;  %v3777_v56 = vmul.f32 %v3032_v38, %v4724_v24  ;;  %1345 = vmatpush2.bf16.msra.mxu0 %v4726_v42  ;;  %v3792_v63 = vmul.f32 %v3025_v32, %v404_v0  ;;  %v886_v37 = vld [vmem:[%s4307_s3 + $0x510] sm:$0xff]  ;;  %v4728_v24 = vld [vmem:[#allocation7_spill] sm:$0xff] }
 0x115   :  { %1346 = vmatprep.subr.bf16.mxu0 %v4727_v10  ;;  %v3806_v28 = vmul.f32 %v3025_v32, %v410_v22  ;;  %v3809_v0 = vmul.f32 %v3025_v32, %v476_v2  ;;  %v701_v33 = vpack.c.bf16 %v4729_v43, %v4728_v24  ;;  %1559 = vmatpush2.bf16.msra.mxu1 %v4726_v42  ;;  %v4730_v45 = vld [vmem:[#allocation4_spill] sm:$0xff]  ;;  %v4731_v1 = vld [vmem:[#allocation3_spill] sm:$0xff]  ;;  %v4733_v22 = vld [vmem:[#allocation5_spill] sm:$0xff]  ;;  %v444_v42 = vunpack.c.l.bf16 %v4593_v31 }
 0x116   :  { %4723 = vst [vmem:[#allocation45_spill] sm:$0xff] %v3772_v19  ;;  %4725 = vst [vmem:[#allocation34_spill] sm:$0xff] %v3777_v56  ;;  %v723_v40 = vpack.c.bf16 %v3789_v16, %v3786_v53  ;;  %v3817_v57 = vmul.f32 %v3025_v32, %v482_v49  ;;  %v4732_v38 = vpack.c.bf16 %v4730_v45, %v4731_v1  ;;  %v4734_v19 = vld [vmem:[#allocation6_spill] sm:$0xff]  ;;  %v1589_v2 = vld [vmem:[%s4309_s4 + $0x188] sm:$0xff]  ;;  %1544 = vmatprep.subr.bf16.mxu1 %v4727_v10 }
 0x117   :  { %v696_v56 = vpack.c.bf16 %v4734_v19, %v4733_v22  ;;  %v438_v43 = vunpack.c.l.bf16 %v1589_v2  ;;  %v686_v32 = vpack.c.bf16 %v3806_v28, %v3792_v63  ;;  %v4735_v49 = vld [vmem:[#allocation28_spill] sm:$0xff]  ;;  %v4736_v53 = vld [vmem:[#allocation54_spill] sm:$0xff]  ;;  %v996_v16 = vpack.c.bf16 %v886_v37, %v884_v41  ;;  %v4737_v45 = vld [vmem:[#allocation13_spill] sm:$0xff] }
 0x118   :  { %1115 = vmatmul.mubr.bf16.gmra.mxu0 %v4732_v38  ;;  %v703_v1 = vpack.c.bf16 %v3308_v9, %v4735_v49  ;;  %v722_v19 = vpack.c.bf16 %v3817_v57, %v3809_v0  ;;  %v4738_v38 = vunpack.c.l.bf16 %v4737_v45  ;;  %v4739_v24 = vld [vmem:[#allocation14_spill] sm:$0xff]  ;;  %v4741_v63 = vld [vmem:[#allocation55_spill] sm:$0xff]  ;;  %v4742_v41 = vpack.c.bf16 %v3293_v36, %v3273_v34  ;;  %v4751_v49 = vld [vmem:[#allocation36_spill] sm:$0xff] }
 0x119   :  { %1124 = vmatprep.mubr.bf16.mxu0 %v701_v33  ;;  %1347 = vmatpush2.bf16.msra.mxu0 %v4736_v53  ;;  %v4740_v10 = vunpack.c.l.bf16 %v4739_v24  ;;  %v606_v9 = vmul.f32 %v2786_v46, %v438_v43  ;;  %v612_v33 = vmul.f32 %v2786_v46, %v444_v42  ;;  %v4744_v37 = vld [vmem:[#allocation35_spill] sm:$0xff]  ;;  %v4747_v2 = vld [vmem:[#allocation10_spill] sm:$0xff]  ;;  %v4749_v46 = vld [vmem:[#allocation41_spill] sm:$0xff]  ;;  %v4757_v45 = vpack.c.bf16 %v3382_v44, %v3372_v20 }
 0x11a   :  { %1268 = vmatmul.mubr.bf16.gmra.mxu1 %v696_v56  ;;  %v604_v31 = vmul.f32 %v2764_v23, %v4738_v38  ;;  %1348 = vmatprep.subr.bf16.mxu0 %v4741_v63  ;;  %v4746_v0 = vld [vmem:[#allocation11_spill] sm:$0xff]  ;;  %v4750_v42 = vpack.c.bf16 %v3354_v26, %v4749_v46  ;;  %v4755_v34 = vld [vmem:[#allocation17_spill] sm:$0xff]  ;;  %v4758_v38 = vpack.c.bf16 %v3405_v13, %v3400_v50  ;;  %v4761_v24 = vld [vmem:[#allocation18_spill] sm:$0xff] }
 0x11b   :  { %v610_v22 = vmul.f32 %v2764_v23, %v4740_v10  ;;  %1277 = vmatprep.mubr.bf16.mxu1 %v703_v1  ;;  %1560 = vmatpush2.bf16.msra.mxu1 %v4736_v53  ;;  %v702_v56 = vpack.c.bf16 %v612_v33, %v606_v9  ;;  %v4743_v23 = vld [vmem:[#allocation9_spill] sm:$0xff]  ;;  %v4748_v43 = vpack.c.bf16 %v4746_v0, %v4747_v2  ;;  %v4752_v1 = vld [vmem:[#allocation12_spill] sm:$0xff]  ;;  %v4762_v10 = vld [vmem:[#allocation15_spill] sm:$0xff] }
 0x11c   :  { %1545 = vmatprep.subr.bf16.mxu1 %v4741_v63  ;;  %v4745_v28 = vpack.c.bf16 %v4743_v23, %v4744_v37  ;;  %v4753_v53 = vpack.c.bf16 %v4751_v49, %v4752_v1  ;;  %v4759_v26 = vpack.c.bf16 %v3395_v51, %v3387_v29  ;;  %v4764_v63 = vld [vmem:[#allocation24_spill] sm:$0xff]  ;;  %v4765_v9 = vld [vmem:[#allocation22_spill] sm:$0xff]  ;;  %v4768_v33 = vld [vmem:[#allocation19_spill] sm:$0xff]  ;;  %v4779_v37 = vpack.c.bf16 %v3549_v12, %v3544_v30 }
 0x11d   :  { %1349 = vmatpush2.bf16.msra.mxu0 %v996_v16  ;;  %v700_v57 = vpack.c.bf16 %v610_v22, %v604_v31  ;;  %v4760_v31 = vpack.c.bf16 %v3421_v27, %v3416_v39  ;;  %v4763_v22 = vpack.c.bf16 %v4761_v24, %v4762_v10  ;;  %v4766_v44 = vpack.c.bf16 %v4764_v63, %v4765_v9  ;;  %v4767_v20 = vld [vmem:[#allocation16_spill] sm:$0xff]  ;;  %v4770_v13 = vld [vmem:[#allocation26_spill] sm:$0xff]  ;;  %v4772_v29 = vld [vmem:[#allocation23_spill] sm:$0xff] }
 0x11e   :  { %v4769_v50 = vpack.c.bf16 %v4767_v20, %v4768_v33  ;;  %v4771_v51 = vpack.c.bf16 %v3509_v4, %v4770_v13  ;;  %v4775_v39 = vpack.c.bf16 %v3529_v3, %v3524_v17  ;;  %v4780_v4 = vpack.c.bf16 %v3570_v18, %v3565_v25  ;;  %v4782_v0 = vld [vmem:[#allocation29_spill] sm:$0xff]  ;;  %v4784_v17 = vld [vmem:[#allocation30_spill] sm:$0xff]  ;;  %v4787_v46 = vld [vmem:[#allocation43_spill] sm:$0xff] }
 0x11f   :  { %1561 = vmatpush2.bf16.msra.mxu1 %v996_v16  ;;  %v4754_v16 = vld [vmem:[#allocation42_spill] sm:$0xff]  ;;  %v4783_v3 = vpack.c.bf16 %v3592_v59, %v4782_v0  ;;  %v4785_v2 = vpack.c.bf16 %v3626_v21, %v4784_v17  ;;  %v4789_v25 = vpack.c.bf16 %v3663_v61, %v3658_v7  ;;  %v4790_v12 = vpack.c.bf16 %v3653_v47, %v3645_v62  ;;  %v4792_v59 = vld [vmem:[#allocation32_spill] sm:$0xff] }
 0x120   :  { %1125 = vmatmul.mubr.bf16.gmra.mxu0 %v700_v57  ;;  %v4756_v36 = vpack.c.bf16 %v4754_v16, %v4755_v34  ;;  %v4773_v57 = vld [vmem:[#allocation20_spill] sm:$0xff]  ;;  %v4791_v18 = vpack.c.bf16 %v3676_v58, %v3671_v48  ;;  %v4795_v21 = vpack.c.bf16 %v3724_v5, %v3712_v54  ;;  %v4796_v7 = vpack.c.bf16 %v3707_v35, %v3696_v14  ;;  %v4799_v61 = vld [vmem:[#allocation34_spill] sm:$0xff]  ;;  %v4801_v58 = vld [vmem:[#allocation45_spill] sm:$0xff] }
 0x121   :  { %1134 = vmatprep.mubr.bf16.mxu0 %v4742_v41  ;;  %v4774_v27 = vpack.c.bf16 %v4772_v29, %v4773_v57  ;;  %v4777_v41 = vld [vmem:[#allocation25_spill] sm:$0xff]  ;;  %v4797_v62 = vpack.c.bf16 %v3741_v8, %v3729_v15  ;;  %v4798_v47 = vpack.c.bf16 %v3758_v55, %v3746_v11  ;;  %v4800_v48 = vpack.c.bf16 %v3780_v60, %v4799_v61 }
 0x122   :  { %1278 = vmatmul.mubr.bf16.gmra.mxu1 %v702_v56  ;;  %v4776_v56 = vld [vmem:[#allocation27_spill] sm:$0xff] }
 0x123   :  { %1287 = vmatprep.mubr.bf16.mxu1 %v4745_v28  ;;  %v4778_v23 = vpack.c.bf16 %v4776_v56, %v4777_v41  ;;  %v4781_v28 = vpack.c.bf16 %v3609_v6, %v3604_v52  ;;  %v4793_v52 = vld [vmem:[#allocation31_spill] sm:$0xff] }
 0x124   :  { %v4794_v6 = vpack.c.bf16 %v4792_v59, %v4793_v52 }
 0x128   :  { %1135 = vmatmul.mubr.bf16.gmra.mxu0 %v4748_v43  ;;  %v4786_v43 = vld [vmem:[#allocation44_spill] sm:$0xff] }
 0x129   :  { %1144 = vmatprep.mubr.bf16.mxu0 %v4750_v42  ;;  %v4788_v30 = vpack.c.bf16 %v4786_v43, %v4787_v46  ;;  %v4802_v42 = vld [vmem:[#allocation33_spill] sm:$0xff] }
 0x12a   :  { %1288 = vmatmul.mubr.bf16.gmra.mxu1 %v4753_v53  ;;  %v4803_v54 = vpack.c.bf16 %v4801_v58, %v4802_v42 }
 0x12b   :  { %1297 = vmatprep.mubr.bf16.mxu1 %v4756_v36 }
 0x130   :  { %1145 = vmatmul.mubr.bf16.gmra.mxu0 %v4757_v45 }
 0x131   :  { %1154 = vmatprep.mubr.bf16.mxu0 %v4758_v38 }
 0x132   :  { %1298 = vmatmul.mubr.bf16.gmra.mxu1 %v4759_v26 }
 0x133   :  { %1307 = vmatprep.mubr.bf16.mxu1 %v4760_v31 }
 0x138   :  { %1155 = vmatmul.mubr.bf16.gmra.mxu0 %v4763_v22 }
 0x139   :  { %1350 = vmatprep.mubr.bf16.mxu0 %v4766_v44 }
 0x13a   :  { %1308 = vmatmul.mubr.bf16.gmra.mxu1 %v4769_v50 }
 0x13b   :  { %1410 = vmatprep.mubr.bf16.mxu1 %v4771_v51 }
 0x140   :  { %1351 = vmatmul.mubr.bf16.vlgmr.msra.gmra.mxu0 %v4774_v27 }
 0x141   :  { %1360 = vmatprep.mubr.bf16.mxu0 %v4775_v39 }
 0x142   :  { %1411 = vmatmul.mubr.bf16.vlgmr.msra.gmra.mxu1 %v4778_v23 }
 0x143   :  { %1420 = vmatprep.mubr.bf16.mxu1 %v4779_v37 }
 0x148   :  { %1361 = vmatmul.mubr.bf16.gmra.mxu0 %v4780_v4 }
 0x149   :  { %1370 = vmatprep.mubr.bf16.mxu0 %v4781_v28 }
 0x14a   :  { %1421 = vmatmul.mubr.bf16.gmra.mxu1 %v4783_v3 }
 0x14b   :  { %1430 = vmatprep.mubr.bf16.mxu1 %v4785_v2 }
 0x150   :  { %1371 = vmatmul.mubr.bf16.gmra.mxu0 %v4788_v30 }
 0x151   :  { %1380 = vmatprep.mubr.bf16.mxu0 %v4789_v25 }
 0x152   :  { %1431 = vmatmul.mubr.bf16.gmra.mxu1 %v4790_v12 }
 0x153   :  { %1440 = vmatprep.mubr.bf16.mxu1 %v4791_v18 }
 0x158   :  { %1381 = vmatmul.mubr.bf16.gmra.mxu0 %v4794_v6 }
 0x159   :  { %1390 = vmatprep.mubr.bf16.mxu0 %v4795_v21 }
 0x15a   :  { %1441 = vmatmul.mubr.bf16.gmra.mxu1 %v4796_v7 }
 0x15b   :  { %1450 = vmatprep.mubr.bf16.mxu1 %v4797_v62 }
 0x160   :  { %1391 = vmatmul.mubr.bf16.gmra.mxu0 %v4798_v47 }
 0x161   :  { %1400 = vmatprep.mubr.bf16.mxu0 %v4800_v48 }
 0x162   :  { %1451 = vmatmul.mubr.bf16.gmra.mxu1 %v4803_v54 }
 0x163   :  { %1460 = vmatprep.mubr.bf16.mxu1 %v723_v40 }
 0x168   :  { %1401 = vmatmul.mubr.bf16.gmra.mxu0 %v686_v32 }
 0x16a   :  { %1461 = vmatmul.mubr.bf16.gmra.mxu1 %v722_v19 }
 0x186   :  { %v1046_v14 = vpop.f32.mrf.mxu0 }
 0x188   :  { %v1048_v5 = vpop.f32.mrf.mxu0 }
 0x18a   :  { %v1199_v35 = vpop.f32.mrf.mxu1  ;;  %v1050_v49 = vpop.f32.mrf.mxu0 }
 0x18b   :  { %v3946_v15 = vadd.f32 %v1199_v35, %v1046_v14 }
 0x18c   :  { %v1201_v8 = vpop.f32.mrf.mxu1  ;;  %v1052_v1 = vpop.f32.mrf.mxu0 }
 0x18d   :  { %v3948_v11 = vadd.f32 %v1201_v8, %v1048_v5 }
 0x18e   :  { %v1203_v55 = vpop.f32.mrf.mxu1  ;;  %v1056_v16 = vpop.f32.mrf.mxu0 }
 0x18f   :  { %v3950_v60 = vadd.f32 %v1203_v55, %v1050_v49 }
 0x190   :  { %v1205_v53 = vpop.f32.mrf.mxu1  ;;  %v1058_v32 = vpop.f32.mrf.mxu0 }
 0x191   :  { %v3952_v34 = vadd.f32 %v1205_v53, %v1052_v1 }
 0x192   :  { %v1209_v40 = vpop.f32.mrf.mxu1  ;;  %v1060_v45 = vpop.f32.mrf.mxu0 }
 0x193   :  { %v3954_v19 = vadd.f32 %v1209_v40, %v1056_v16 }
 0x194   :  { %v1211_v36 = vpop.f32.mrf.mxu1  ;;  %v1062_v31 = vpop.f32.mrf.mxu0 }
 0x195   :  { %v3956_v38 = vadd.f32 %v1211_v36, %v1058_v32 }
 0x196   :  { %v1213_v26 = vpop.f32.mrf.mxu1 }
 0x197   :  { %v3958_v24 = vadd.f32 %v1213_v26, %v1060_v45 }
 0x198   :  { %v1215_v10 = vpop.f32.mrf.mxu1  ;;  %v1066_v22 = vpop.f32.mrf.mxu0 }
 0x199   :  { %v3960_v63 = vadd.f32 %v1215_v10, %v1062_v31 }
 0x19a   :  { %v1219_v9 = vpop.f32.mrf.mxu1  ;;  %v1068_v44 = vpop.f32.mrf.mxu0 }
 0x19b   :  { %v3962_v20 = vadd.f32 %v1219_v9, %v1066_v22 }
 0x19c   :  { %v1221_v33 = vpop.f32.mrf.mxu1  ;;  %v1070_v50 = vpop.f32.mrf.mxu0 }
 0x19d   :  { %v3964_v13 = vadd.f32 %v1221_v33, %v1068_v44 }
 0x19e   :  { %v1223_v51 = vpop.f32.mrf.mxu1  ;;  %v1072_v29 = vpop.f32.mrf.mxu0 }
 0x19f   :  { %v3966_v57 = vadd.f32 %v1223_v51, %v1070_v50 }
 0x1a0   :  { %v1225_v27 = vpop.f32.mrf.mxu1 }
 0x1a1   :  { %v3968_v56 = vadd.f32 %v1225_v27, %v1072_v29 }
 0x1a9   :  { %v1076_v39 = vpop.f32.mrf.mxu0  ;;  %v1229_v41 = vpop.f32.mrf.mxu1 }
 0x1aa   :  { %v3970_v37 = vadd.f32 %v1229_v41, %v1076_v39 }
 0x1ab   :  { %v1078_v23 = vpop.f32.mrf.mxu0  ;;  %v1231_v4 = vpop.f32.mrf.mxu1 }
 0x1ac   :  { %v3972_v0 = vadd.f32 %v1231_v4, %v1078_v23 }
 0x1ad   :  { %v1080_v28 = vpop.f32.mrf.mxu0  ;;  %v1233_v3 = vpop.f32.mrf.mxu1 }
 0x1ae   :  { %v3974_v2 = vadd.f32 %v1233_v3, %v1080_v28 }
 0x1af   :  { %v1082_v17 = vpop.f32.mrf.mxu0  ;;  %v1235_v43 = vpop.f32.mrf.mxu1 }
 0x1b0   :  { %v3976_v30 = vadd.f32 %v1235_v43, %v1082_v17 }
 0x1b1   :  { %v1086_v46 = vpop.f32.mrf.mxu0 }
 0x1b3   :  { %v1088_v12 = vpop.f32.mrf.mxu0 }
 0x1b5   :  { %v1090_v52 = vpop.f32.mrf.mxu0 }
 0x1b7   :  { %v1092_v7 = vpop.f32.mrf.mxu0 }
 0x1ba   :  { %v1239_v25 = vpop.f32.mrf.mxu1 }
 0x1bb   :  { %v3978_v18 = vadd.f32 %v1239_v25, %v1086_v46 }
 0x1bc   :  { %v1241_v59 = vpop.f32.mrf.mxu1 }
 0x1bd   :  { %v3980_v6 = vadd.f32 %v1241_v59, %v1088_v12 }
 0x1be   :  { %v1243_v21 = vpop.f32.mrf.mxu1 }
 0x1bf   :  { %4804 = vst [vmem:[#allocation46_spill] sm:$0xff] %v3980_v6  ;;  %v3982_v62 = vadd.f32 %v1243_v21, %v1090_v52 }
 0x1c0   :  { %v1245_v47 = vpop.f32.mrf.mxu1  ;;  %v1096_v61 = vpop.f32.mrf.mxu0 }
 0x1c1   :  { %4805 = vst [vmem:[#allocation37_spill] sm:$0xff] %v3982_v62  ;;  %v3984_v48 = vadd.f32 %v1245_v47, %v1092_v7 }
 0x1c2   :  { %v1249_v58 = vpop.f32.mrf.mxu1  ;;  %v1098_v42 = vpop.f32.mrf.mxu0 }
 0x1c3   :  { %4806 = vst [vmem:[#allocation38_spill] sm:$0xff] %v3984_v48  ;;  %v3986_v54 = vadd.f32 %v1249_v58, %v1096_v61 }
 0x1c4   :  { %v1251_v14 = vpop.f32.mrf.mxu1  ;;  %v1100_v35 = vpop.f32.mrf.mxu0 }
 0x1c5   :  { %4807 = vst [vmem:[#allocation39_spill] sm:$0xff] %v3986_v54  ;;  %v3988_v5 = vadd.f32 %v1251_v14, %v1098_v42 }
 0x1c6   :  { %v1253_v8 = vpop.f32.mrf.mxu1  ;;  %v1102_v49 = vpop.f32.mrf.mxu0 }
 0x1c7   :  { %4808 = vst [vmem:[#allocation40_spill] sm:$0xff] %v3988_v5  ;;  %v3990_v55 = vadd.f32 %v1253_v8, %v1100_v35 }
 0x1c8   :  { %v1255_v1 = vpop.f32.mrf.mxu1 }
 0x1c9   :  { %4809 = vst [vmem:[#allocation47_spill] sm:$0xff] %v3990_v55  ;;  %v3992_v16 = vadd.f32 %v1255_v1, %v1102_v49 }
 0x1cb   :  { %4810 = vst [vmem:[#allocation48_spill] sm:$0xff] %v3992_v16 }
 0x1ce   :  { %v1106_v53 = vpop.f32.mrf.mxu0 }
 0x1d0   :  { %v1108_v32 = vpop.f32.mrf.mxu0 }
 0x1d1   :  { %v1259_v40 = vpop.f32.mrf.mxu1 }
 0x1d2   :  { %v1110_v45 = vpop.f32.mrf.mxu0 }
 0x1d3   :  { %v1261_v36 = vpop.f32.mrf.mxu1 }
 0x1d4   :  { %v1112_v31 = vpop.f32.mrf.mxu0 }
 0x1d5   :  { %v1263_v26 = vpop.f32.mrf.mxu1 }
 0x1d7   :  { %v1265_v10 = vpop.f32.mrf.mxu1 }
 0x1d8   :  { %v3994_v22 = vpop.f32.mrf.mxu0 }
 0x1da   :  { %v3996_v9 = vpop.f32.mrf.mxu1  ;;  %v3998_v44 = vpop.f32.mrf.mxu0 }
 0x1dc   :  { %v4000_v33 = vpop.f32.mrf.mxu1  ;;  %v4002_v50 = vpop.f32.mrf.mxu0 }
 0x1de   :  { %v4004_v51 = vpop.f32.mrf.mxu1  ;;  %v4006_v29 = vpop.f32.mrf.mxu0 }
 0x1e0   :  { %v4008_v27 = vpop.f32.mrf.mxu1  ;;  %v4010_v39 = vpop.f32.mrf.mxu0 }
 0x1e2   :  { %v4012_v41 = vpop.f32.mrf.mxu1  ;;  %v4014_v23 = vpop.f32.mrf.mxu0 }
 0x1e4   :  { %v4016_v4 = vpop.f32.mrf.mxu1  ;;  %v4018_v28 = vpop.f32.mrf.mxu0 }
 0x1e6   :  { %v4020_v3 = vpop.f32.mrf.mxu1  ;;  %v4022_v17 = vpop.f32.mrf.mxu0 }
 0x1e8   :  { %v4024_v43 = vpop.f32.mrf.mxu1  ;;  %v4026_v46 = vpop.f32.mrf.mxu0 }
 0x1ea   :  { %v4028_v25 = vpop.f32.mrf.mxu1  ;;  %v4030_v12 = vpop.f32.mrf.mxu0 }
 0x1ec   :  { %v4032_v59 = vpop.f32.mrf.mxu1  ;;  %v4034_v52 = vpop.f32.mrf.mxu0 }
 0x1ee   :  { %v4036_v21 = vpop.f32.mrf.mxu1  ;;  %v4038_v7 = vpop.f32.mrf.mxu0 }
 0x1f0   :  { %v4040_v47 = vpop.f32.mrf.mxu1  ;;  %v4042_v61 = vpop.f32.mrf.mxu0 }
 0x1f2   :  { %v4044_v58 = vpop.f32.mrf.mxu1  ;;  %v4046_v42 = vpop.f32.mrf.mxu0 }
 0x1f4   :  { %v4048_v14 = vpop.f32.mrf.mxu1  ;;  %v4050_v35 = vpop.f32.mrf.mxu0 }
 0x1f5   :  { %4811 = vst [vmem:[#allocation49_spill] sm:$0xff] %v4048_v14  ;;  %4812 = vst [vmem:[#allocation50_spill] sm:$0xff] %v4050_v35 }
 0x1f6   :  { %v4052_v8 = vpop.f32.mrf.mxu1  ;;  %v4054_v49 = vpop.f32.mrf.mxu0 }
 0x1f7   :  { %4813 = vst [vmem:[#allocation2_spill] sm:$0xff] %v4052_v8  ;;  %4814 = vst [vmem:[#allocation21_spill] sm:$0xff] %v4054_v49  ;;  %v1260_v49 = vadd.f32 %v1259_v40, %v1106_v53 }
 0x1f8   :  { %v4056_v1 = vpop.f32.mrf.mxu1  ;;  %v4058_v16 = vpop.f32.mrf.mxu0 }
 0x1f9   :  { %4815 = vst [vmem:[#allocation51_spill] sm:$0xff] %v4056_v1  ;;  %4816 = vst [vmem:[#allocation52_spill] sm:$0xff] %v4058_v16 }
 0x1fa   :  { %v4060_v55 = vpop.f32.mrf.mxu1  ;;  %v4062_v5 = vpop.f32.mrf.mxu0 }
 0x1fb   :  { %4817 = vst [vmem:[#allocation53_spill] sm:$0xff] %v4060_v55  ;;  %4818 = vst [vmem:[#allocation7_spill] sm:$0xff] %v4062_v5  ;;  %v1262_v55 = vadd.f32 %v1261_v36, %v1108_v32  ;;  %v1266_v36 = vadd.f32 %v1265_v10, %v1112_v31 }
 0x1fc   :  { %v4064_v54 = vpop.f32.mrf.mxu1  ;;  %v4066_v48 = vpop.f32.mrf.mxu0 }
 0x1fd   :  { %4819 = vst [vmem:[#allocation8_spill] sm:$0xff] %v4064_v54  ;;  %4820 = vst [vmem:[#allocation4_spill] sm:$0xff] %v4066_v48 }
 0x1fe   :  { %v4068_v62 = vpop.f32.mrf.mxu1  ;;  %v4070_v6 = vpop.f32.mrf.mxu0 }
 0x1ff   :  { %4821 = vst [vmem:[#allocation3_spill] sm:$0xff] %v4068_v62  ;;  %4822 = vst [vmem:[#allocation5_spill] sm:$0xff] %v4070_v6  ;;  %v1264_v6 = vadd.f32 %v1263_v26, %v1110_v45 }
 0x200   :  { %v4072_v35 = vpop.f32.mrf.mxu1  ;;  %v1352_v8 = vpop.f32.mrf.mxu0 }
 0x201   :  { %v1353_v1 = vadd.f32 %v1352_v8, %v3946_v15 }
 0x202   :  { %v1412_v14 = vpop.f32.mrf.mxu1  ;;  %v1354_v16 = vpop.f32.mrf.mxu0 }
 0x203   :  { %1471 = vst [vmem:[%s4311_s5] sm:$0xff] %v1353_v1  ;;  %v1413_v54 = vadd.f32 %v1412_v14, %v1260_v49  ;;  %v1355_v48 = vadd.f32 %v1354_v16, %v3948_v11 }
 0x204   :  { %v1414_v62 = vpop.f32.mrf.mxu1  ;;  %v1356_v5 = vpop.f32.mrf.mxu0 }
 0x205   :  { %1496 = vst [vmem:[%s4311_s5 + $0xc0] sm:$0xff] %v1413_v54  ;;  %1473 = vst.msk [vmem:[%s4311_s5 + $0x8] sm:$0xff] %vm1472_vm0, %v1355_v48  ;;  %v1415_v15 = vadd.f32 %v1414_v62, %v1262_v55  ;;  %v1357_v53 = vadd.f32 %v1356_v5, %v3950_v60  ;;  %v1270_v60 = vadd.f32 %v3996_v9, %v3994_v22 }
 0x206   :  { %v1416_v40 = vpop.f32.mrf.mxu1  ;;  %v1358_v32 = vpop.f32.mrf.mxu0 }
 0x207   :  { %1497 = vst.msk [vmem:[%s4311_s5 + $0xc8] sm:$0xff] %vm1472_vm0, %v1415_v15  ;;  %1474 = vst [vmem:[%s4311_s5 + $0x10] sm:$0xff] %v1357_v53  ;;  %v1417_v11 = vadd.f32 %v1416_v40, %v1264_v6  ;;  %v1359_v54 = vadd.f32 %v1358_v32, %v3952_v34  ;;  %v1272_v34 = vadd.f32 %v4000_v33, %v3998_v44 }
 0x208   :  { %v1418_v16 = vpop.f32.mrf.mxu1  ;;  %v1362_v48 = vpop.f32.mrf.mxu0 }
 0x209   :  { %1498 = vst [vmem:[%s4311_s5 + $0xd0] sm:$0xff] %v1417_v11  ;;  %1475 = vst.msk [vmem:[%s4311_s5 + $0x18] sm:$0xff] %vm1472_vm0, %v1359_v54  ;;  %v1419_v62 = vadd.f32 %v1418_v16, %v1266_v36  ;;  %v1363_v5 = vadd.f32 %v1362_v48, %v3954_v19  ;;  %v1274_v19 = vadd.f32 %v4004_v51, %v4002_v50 }
 0x20a   :  { %v1422_v6 = vpop.f32.mrf.mxu1  ;;  %v1364_v55 = vpop.f32.mrf.mxu0 }
 0x20b   :  { %1499 = vst.msk [vmem:[%s4311_s5 + $0xd8] sm:$0xff] %vm1472_vm0, %v1419_v62  ;;  %1476 = vst [vmem:[%s4311_s5 + $0x20] sm:$0xff] %v1363_v5  ;;  %v1423_v45 = vadd.f32 %v1422_v6, %v1270_v60  ;;  %v1365_v26 = vadd.f32 %v1364_v55, %v3956_v38  ;;  %v1276_v38 = vadd.f32 %v4008_v27, %v4006_v29 }
 0x20c   :  { %v1424_v31 = vpop.f32.mrf.mxu1  ;;  %v1366_v10 = vpop.f32.mrf.mxu0 }
 0x20d   :  { %1500 = vst [vmem:[%s4311_s5 + $0xe0] sm:$0xff] %v1423_v45  ;;  %1477 = vst.msk [vmem:[%s4311_s5 + $0x28] sm:$0xff] %vm1472_vm0, %v1365_v26  ;;  %v1425_v22 = vadd.f32 %v1424_v31, %v1272_v34  ;;  %v1367_v9 = vadd.f32 %v1366_v10, %v3958_v24  ;;  %v1280_v24 = vadd.f32 %v4012_v41, %v4010_v39 }
 0x20e   :  { %v1426_v44 = vpop.f32.mrf.mxu1  ;;  %v1368_v33 = vpop.f32.mrf.mxu0 }
 0x20f   :  { %1501 = vst.msk [vmem:[%s4311_s5 + $0xe8] sm:$0xff] %vm1472_vm0, %v1425_v22  ;;  %1478 = vst [vmem:[%s4311_s5 + $0x30] sm:$0xff] %v1367_v9  ;;  %v1427_v50 = vadd.f32 %v1426_v44, %v1274_v19  ;;  %v1369_v51 = vadd.f32 %v1368_v33, %v3960_v63  ;;  %v1282_v63 = vadd.f32 %v4016_v4, %v4014_v23  ;;  %v4826_v22 = vld [vmem:[#allocation2_spill] sm:$0xff]  ;;  %v4827_v44 = vld [vmem:[#allocation37_spill] sm:$0xff] }
 0x210   :  { %v1428_v14 = vpop.f32.mrf.mxu1  ;;  %v1372_v8 = vpop.f32.mrf.mxu0 }
 0x211   :  { %1502 = vst [vmem:[%s4311_s5 + $0xf0] sm:$0xff] %v1427_v50  ;;  %1479 = vst.msk [vmem:[%s4311_s5 + $0x38] sm:$0xff] %vm1472_vm0, %v1369_v51  ;;  %v1429_v29 = vadd.f32 %v1428_v14, %v1276_v38  ;;  %v1373_v27 = vadd.f32 %v1372_v8, %v3962_v20  ;;  %v1284_v20 = vadd.f32 %v4020_v3, %v4018_v28  ;;  %v4828_v51 = vld [vmem:[#allocation21_spill] sm:$0xff]  ;;  %v4829_v14 = vld [vmem:[#allocation51_spill] sm:$0xff] }
 0x212   :  { %v1432_v49 = vpop.f32.mrf.mxu1  ;;  %v1374_v1 = vpop.f32.mrf.mxu0  ;;  %v1306_v8 = vadd.f32 %v4829_v14, %v4828_v51 }
 0x213   :  { %1503 = vst.msk [vmem:[%s4311_s5 + $0xf8] sm:$0xff] %vm1472_vm0, %v1429_v29  ;;  %1480 = vst [vmem:[%s4311_s5 + $0x40] sm:$0xff] %v1373_v27  ;;  %v1433_v39 = vadd.f32 %v1432_v49, %v1280_v24  ;;  %v1375_v41 = vadd.f32 %v1374_v1, %v3964_v13  ;;  %v1286_v13 = vadd.f32 %v4024_v43, %v4022_v17  ;;  %v4830_v29 = vld [vmem:[#allocation38_spill] sm:$0xff] }
 0x214   :  { %v1434_v15 = vpop.f32.mrf.mxu1  ;;  %v1376_v53 = vpop.f32.mrf.mxu0 }
 0x215   :  { %1504 = vst [vmem:[%s4311_s5 + $0x100] sm:$0xff] %v1433_v39  ;;  %1481 = vst.msk [vmem:[%s4311_s5 + $0x48] sm:$0xff] %vm1472_vm0, %v1375_v41  ;;  %v1435_v23 = vadd.f32 %v1434_v15, %v1282_v63  ;;  %v1377_v4 = vadd.f32 %v1376_v53, %v3966_v57  ;;  %v1290_v57 = vadd.f32 %v4028_v25, %v4026_v46  ;;  %v4831_v63 = vld [vmem:[#allocation52_spill] sm:$0xff]  ;;  %v4832_v39 = vld [vmem:[#allocation53_spill] sm:$0xff] }
 0x216   :  { %v1436_v40 = vpop.f32.mrf.mxu1  ;;  %v1378_v32 = vpop.f32.mrf.mxu0  ;;  %v1310_v41 = vadd.f32 %v4832_v39, %v4831_v63  ;;  %v4833_v53 = vld [vmem:[#allocation39_spill] sm:$0xff] }
 0x217   :  { %1505 = vst.msk [vmem:[%s4311_s5 + $0x108] sm:$0xff] %vm1472_vm0, %v1435_v23  ;;  %1482 = vst [vmem:[%s4311_s5 + $0x50] sm:$0xff] %v1377_v4  ;;  %v1437_v28 = vadd.f32 %v1436_v40, %v1284_v20  ;;  %v1379_v3 = vadd.f32 %v1378_v32, %v3968_v56  ;;  %v1292_v56 = vadd.f32 %v4032_v59, %v4030_v12  ;;  %v4834_v40 = vld [vmem:[#allocation7_spill] sm:$0xff]  ;;  %v4835_v32 = vld [vmem:[#allocation8_spill] sm:$0xff] }
 0x218   :  { %v1438_v36 = vpop.f32.mrf.mxu1  ;;  %v1382_v11 = vpop.f32.mrf.mxu0 }
 0x219   :  { %1506 = vst [vmem:[%s4311_s5 + $0x110] sm:$0xff] %v1437_v28  ;;  %1483 = vst.msk [vmem:[%s4311_s5 + $0x58] sm:$0xff] %vm1472_vm0, %v1379_v3  ;;  %v1439_v17 = vadd.f32 %v1438_v36, %v1286_v13  ;;  %v1383_v43 = vadd.f32 %v1382_v11, %v3970_v37  ;;  %v1294_v37 = vadd.f32 %v4036_v21, %v4034_v52  ;;  %v4836_v3 = vld [vmem:[#allocation40_spill] sm:$0xff] }
 0x21a   :  { %v1442_v54 = vpop.f32.mrf.mxu1  ;;  %v1384_v16 = vpop.f32.mrf.mxu0  ;;  %v1312_v13 = vadd.f32 %v4835_v32, %v4834_v40 }
 0x21b   :  { %1507 = vst.msk [vmem:[%s4311_s5 + $0x118] sm:$0xff] %vm1472_vm0, %v1439_v17  ;;  %1484 = vst [vmem:[%s4311_s5 + $0x60] sm:$0xff] %v1383_v43  ;;  %v1443_v46 = vadd.f32 %v1442_v54, %v1290_v57  ;;  %v1385_v25 = vadd.f32 %v1384_v16, %v3972_v0  ;;  %v1296_v0 = vadd.f32 %v4040_v47, %v4038_v7  ;;  %v4837_v17 = vld [vmem:[#allocation4_spill] sm:$0xff]  ;;  %v4838_v43 = vld [vmem:[#allocation3_spill] sm:$0xff] }
 0x21c   :  { %v1444_v48 = vpop.f32.mrf.mxu1  ;;  %v1386_v60 = vpop.f32.mrf.mxu0  ;;  %v1314_v54 = vadd.f32 %v4838_v43, %v4837_v17 }
 0x21d   :  { %1508 = vst [vmem:[%s4311_s5 + $0x120] sm:$0xff] %v1443_v46  ;;  %1485 = vst.msk [vmem:[%s4311_s5 + $0x68] sm:$0xff] %vm1472_vm0, %v1385_v25  ;;  %v1445_v12 = vadd.f32 %v1444_v48, %v1292_v56  ;;  %v1387_v59 = vadd.f32 %v1386_v60, %v3974_v2  ;;  %v1300_v2 = vadd.f32 %v4044_v58, %v4042_v61  ;;  %v4824_v58 = vld [vmem:[#allocation46_spill] sm:$0xff]  ;;  %v4839_v56 = vld [vmem:[#allocation47_spill] sm:$0xff] }
 0x21e   :  { %v1446_v62 = vpop.f32.mrf.mxu1  ;;  %v1388_v5 = vpop.f32.mrf.mxu0  ;;  %v4840_v60 = vld [vmem:[#allocation5_spill] sm:$0xff] }
 0x21f   :  { %1509 = vst.msk [vmem:[%s4311_s5 + $0x128] sm:$0xff] %vm1472_vm0, %v1445_v12  ;;  %1486 = vst [vmem:[%s4311_s5 + $0x70] sm:$0xff] %v1387_v59  ;;  %v1447_v52 = vadd.f32 %v1446_v62, %v1294_v37  ;;  %v1389_v21 = vadd.f32 %v1388_v5, %v3976_v30  ;;  %v4823_v30 = vld [vmem:[#allocation49_spill] sm:$0xff]  ;;  %v1316_v37 = vadd.f32 %v4072_v35, %v4840_v60  ;;  %v4841_v59 = vld [vmem:[#allocation48_spill] sm:$0xff] }
 0x220   :  { %v1448_v6 = vpop.f32.mrf.mxu1  ;;  %v1392_v55 = vpop.f32.mrf.mxu0  ;;  %v1302_v26 = vadd.f32 %v4823_v30, %v4046_v42 }
 0x221   :  { %1510 = vst [vmem:[%s4311_s5 + $0x130] sm:$0xff] %v1447_v52  ;;  %1487 = vst.msk [vmem:[%s4311_s5 + $0x78] sm:$0xff] %vm1472_vm0, %v1389_v21  ;;  %v1449_v7 = vadd.f32 %v1448_v6, %v1296_v0  ;;  %v1393_v47 = vadd.f32 %v1392_v55, %v3978_v18  ;;  %v4825_v18 = vld [vmem:[#allocation50_spill] sm:$0xff] }
 0x222   :  { %v1452_v34 = vpop.f32.mrf.mxu1  ;;  %v1394_v45 = vpop.f32.mrf.mxu0  ;;  %v1304_v9 = vadd.f32 %v4826_v22, %v4825_v18 }
 0x223   :  { %1511 = vst.msk [vmem:[%s4311_s5 + $0x138] sm:$0xff] %vm1472_vm0, %v1449_v7  ;;  %1488 = vst [vmem:[%s4311_s5 + $0x80] sm:$0xff] %v1393_v47  ;;  %v1453_v61 = vadd.f32 %v1452_v34, %v1300_v2  ;;  %v1395_v31 = vadd.f32 %v1394_v45, %v4824_v58 }
 0x224   :  { %v1454_v10 = vpop.f32.mrf.mxu1  ;;  %v1396_v19 = vpop.f32.mrf.mxu0 }
 0x225   :  { %1512 = vst [vmem:[%s4311_s5 + $0x140] sm:$0xff] %v1453_v61  ;;  %1489 = vst.msk [vmem:[%s4311_s5 + $0x88] sm:$0xff] %vm1472_vm0, %v1395_v31  ;;  %v1455_v42 = vadd.f32 %v1454_v10, %v1302_v26  ;;  %v1397_v33 = vadd.f32 %v1396_v19, %v4827_v44 }
 0x226   :  { %v1456_v38 = vpop.f32.mrf.mxu1  ;;  %v1398_v50 = vpop.f32.mrf.mxu0 }
 0x227   :  { %1513 = vst.msk [vmem:[%s4311_s5 + $0x148] sm:$0xff] %vm1472_vm0, %v1455_v42  ;;  %1490 = vst [vmem:[%s4311_s5 + $0x90] sm:$0xff] %v1397_v33  ;;  %v1457_v24 = vadd.f32 %v1456_v38, %v1304_v9  ;;  %v1399_v27 = vadd.f32 %v1398_v50, %v4830_v29 }
 0x228   :  { %v1458_v49 = vpop.f32.mrf.mxu1  ;;  %v1402_v1 = vpop.f32.mrf.mxu0 }
 0x229   :  { %1514 = vst [vmem:[%s4311_s5 + $0x150] sm:$0xff] %v1457_v24  ;;  %1491 = vst.msk [vmem:[%s4311_s5 + $0x98] sm:$0xff] %vm1472_vm0, %v1399_v27  ;;  %v1459_v15 = vadd.f32 %v1458_v49, %v1306_v8  ;;  %v1403_v20 = vadd.f32 %v1402_v1, %v4833_v53 }
 0x22a   :  { %v1462_v23 = vpop.f32.mrf.mxu1  ;;  %v1404_v4 = vpop.f32.mrf.mxu0 }
 0x22b   :  { %1515 = vst.msk [vmem:[%s4311_s5 + $0x158] sm:$0xff] %vm1472_vm0, %v1459_v15  ;;  %1492 = vst [vmem:[%s4311_s5 + $0xa0] sm:$0xff] %v1403_v20  ;;  %v1463_v28 = vadd.f32 %v1462_v23, %v1310_v41  ;;  %v1405_v36 = vadd.f32 %v1404_v4, %v4836_v3 }
 0x22c   :  { %v1464_v11 = vpop.f32.mrf.mxu1  ;;  %v1406_v57 = vpop.f32.mrf.mxu0 }
 0x22d   :  { %1516 = vst [vmem:[%s4311_s5 + $0x160] sm:$0xff] %v1463_v28  ;;  %1493 = vst.msk [vmem:[%s4311_s5 + $0xa8] sm:$0xff] %vm1472_vm0, %v1405_v36  ;;  %v1465_v16 = vadd.f32 %v1464_v11, %v1312_v13  ;;  %v1407_v46 = vadd.f32 %v1406_v57, %v4839_v56 }
 0x22e   :  { %v1466_v25 = vpop.f32.mrf.mxu1  ;;  %v1408_v48 = vpop.f32.mrf.mxu0 }
 0x22f   :  { %1517 = vst.msk [vmem:[%s4311_s5 + $0x168] sm:$0xff] %vm1472_vm0, %v1465_v16  ;;  %1494 = vst [vmem:[%s4311_s5 + $0xb0] sm:$0xff] %v1407_v46  ;;  %v1467_v12 = vadd.f32 %v1466_v25, %v1314_v54  ;;  %v1409_v62 = vadd.f32 %v1408_v48, %v4841_v59 }
 0x230   :  { %v1468_v5 = vpop.f32.mrf.mxu1 }
 0x231   :  { %1518 = vst [vmem:[%s4311_s5 + $0x170] sm:$0xff] %v1467_v12  ;;  %1495 = vst.msk [vmem:[%s4311_s5 + $0xb8] sm:$0xff] %vm1472_vm0, %v1409_v62  ;;  %v1469_v35 = vadd.f32 %v1468_v5, %v1316_v37 }
 0x233   :  { %1519 = vst.msk [vmem:[%s4311_s5 + $0x178] sm:$0xff] %vm1472_vm0, %v1469_v35 }

</bundles_post_ra>
